<compile_context>
chip_gen: v6e
topology: v6e:2x2x1
jax: 0.10.0
libtpu: 0.0.40
codegen_flags: <defaults>
</compile_context>

<pallas_src>
import math

import jax
import jax.numpy as jnp
from jax import lax
from jax.experimental import pallas as pl
from jax.experimental.pallas import tpu as pltpu

LN_EPS = 1e-5  # nn.LayerNorm default eps


def _layer_norm(x, g, b):
    """LayerNorm over last dim (centered variance for numerical safety)."""
    mu = jnp.mean(x, axis=-1, keepdims=True)
    d = x - mu
    var = jnp.mean(d * d, axis=-1, keepdims=True)
    return d * lax.rsqrt(var + LN_EPS) * g + b


# --------------------------------------------------------------------------
# Fused encoder-stack kernel: one grid step = (batch tile bt, layer l)
# --------------------------------------------------------------------------
def _make_encoder_kernel(num_heads: int, apply_final_norm: bool, mask_mode: str):
    def kernel(*refs):
        it = iter(refs)
        src_ref = next(it)
        pos_ref = next(it)
        mask_ref = next(it) if mask_mode != "none" else None
        wqk_ref = next(it)
        wv_ref = next(it)
        wo_ref = next(it)
        wf1_ref = next(it)
        wf2_ref = next(it)
        vec_ref = next(it)
        bf1_ref = next(it)
        fin_ref = next(it) if apply_final_norm else None
        o_ref = next(it)      # output block == VMEM-resident running activation
        ctx_ref = next(it)    # (TB, S, D) f32 scratch for per-head context

        l = pl.program_id(1)
        last = pl.num_programs(1) - 1
        TB, S, D = o_ref.shape
        hd = D // num_heads
        scale = 1.0 / math.sqrt(hd)
        bf16 = jnp.bfloat16

        # First layer of this batch tile: seed the resident activation.
        @pl.when(l == 0)
        def _():
            o_ref[...] = src_ref[...]

        # Packed per-layer 1-D parameters (f32): rows of a (9, D) block.
        vec = vec_ref[0]
        b_q, b_k, b_v, b_o = vec[0:1], vec[1:2], vec[2:3], vec[3:4]
        g1, be1 = vec[4:5], vec[5:6]
        b_f2, g2, be2 = vec[6:7], vec[7:8], vec[8:9]
        b_f1 = bf1_ref[0]                              # (1, F)

        x = o_ref[...].reshape(TB * S, D)              # running activation (f32)
        pos = pos_ref[...].reshape(TB * S, D)

        # ---- multi-head self-attention (q, k carry the positional embedding) --
        qk_in = (x + pos).astype(bf16)
        qk = jnp.dot(qk_in, wqk_ref[0], preferred_element_type=jnp.float32)
        q = (qk[:, :D] + b_q) * scale                  # scale folded into q once
        k = qk[:, D:] + b_k
        v = jnp.dot(x.astype(bf16), wv_ref[0],
                    preferred_element_type=jnp.float32) + b_v

        q3 = q.reshape(TB, S, D).astype(bf16)
        k3 = k.reshape(TB, S, D).astype(bf16)
        v3 = v.reshape(TB, S, D).astype(bf16)

        for b in range(TB):                            # static unroll (small TB)
            mb = mask_ref[b] if mask_ref is not None else None   # (S,S) or (1,S)
            for h in range(num_heads):                 # static unroll over heads
                sl = slice(h * hd, (h + 1) * hd)
                # contract last axes -> no materialized K transpose
                sc = lax.dot_general(q3[b, :, sl], k3[b, :, sl],
                                     (((1,), (1,)), ((), ())),
                                     preferred_element_type=jnp.float32)
                if mb is not None:
                    sc = sc + mb
                m = jnp.max(sc, axis=-1, keepdims=True)
                e = jnp.exp(sc - m)
                s = jnp.sum(e, axis=-1, keepdims=True)
                pr = (e * pl.reciprocal(s, approx=True)).astype(bf16)
                ctx_ref[b, :, sl] = jnp.dot(pr, v3[b, :, sl],
                                            preferred_element_type=jnp.float32)

        ctx = ctx_ref[...].reshape(TB * S, D).astype(bf16)
        attn = jnp.dot(ctx, wo_ref[0], preferred_element_type=jnp.float32) + b_o
        x = _layer_norm(x + attn, g1, be1)

        # ---- feed-forward ---------------------------------------------------
        h1 = jnp.dot(x.astype(bf16), wf1_ref[0],
                     preferred_element_type=jnp.float32) + b_f1
        h1 = jnp.maximum(h1, 0.0)                      # ReLU
        ff = jnp.dot(h1.astype(bf16), wf2_ref[0],
                     preferred_element_type=jnp.float32) + b_f2
        x = _layer_norm(x + ff, g2, be2)

        # ---- store (final `norm` folded into the last-layer store) ----------
        if apply_final_norm:
            @pl.when(l != last)
            def _():
                o_ref[...] = x.reshape(TB, S, D)

            @pl.when(l == last)
            def _():
                o_ref[...] = _layer_norm(x, fin_ref[0:1],
                                         fin_ref[1:2]).reshape(TB, S, D)
        else:
            o_ref[...] = x.reshape(TB, S, D)

    return kernel


# --------------------------------------------------------------------------
# Public wrapper — matches TransformerEncoder.forward (src layout (S, B, D)).
# --------------------------------------------------------------------------
def transformer_encoder_forward(src, params, *, nhead, pos=None, mask=None,
                                src_key_padding_mask=None, batch_tile=8):
    S, B, D = src.shape
    L = params["w_q"].shape[0]
    F = params["w_ff1"].shape[-1]
    apply_final_norm = "normf_g" in params
    f32, bf16 = jnp.float32, jnp.bfloat16

    x = jnp.transpose(src, (1, 0, 2)).astype(f32)                     # (B, S, D)
    pos_b = (jnp.zeros_like(x) if pos is None
             else jnp.transpose(pos, (1, 0, 2)).astype(f32))

    # ---- mask specialization (skip / rank-1 / full) -------------------------
    if mask is not None:
        m = jnp.asarray(mask)
        if m.dtype == jnp.bool_:
            m = jnp.where(m, -1e9, 0.0)
        add_mask = jnp.broadcast_to(m.astype(f32)[None, :, :], (B, S, S))
        if src_key_padding_mask is not None:
            add_mask = add_mask + jnp.where(
                src_key_padding_mask[:, None, :], -1e9, 0.0).astype(f32)
        mask_mode = "full"
    elif src_key_padding_mask is not None:
        add_mask = jnp.where(
            src_key_padding_mask[:, None, :], -1e9, 0.0).astype(f32)   # (B,1,S)
        mask_mode = "padding"
    else:
        add_mask = None
        mask_mode = "none"

    # ---- batch tiling: whole tile resident; weights fetched once per tile ---
    TB = B if B <= batch_tile else batch_tile
    B_pad = ((B + TB - 1) // TB) * TB
    if B_pad != B:
        padw = ((0, B_pad - B), (0, 0), (0, 0))
        x = jnp.pad(x, padw)
        pos_b = jnp.pad(pos_b, padw)
        if add_mask is not None:
            add_mask = jnp.pad(add_mask, padw)

    # ---- weights: bf16 for the MXU, packed small vectors in f32 -------------
    w_qk = jnp.concatenate([params["w_q"], params["w_k"]], axis=-1).astype(bf16)
    w_v = params["w_v"].astype(bf16)
    w_o = params["w_o"].astype(bf16)
    w_f1 = params["w_ff1"].astype(bf16)
    w_f2 = params["w_ff2"].astype(bf16)
    vec = jnp.stack([params["b_q"], params["b_k"], params["b_v"], params["b_o"],
                     params["ln1_g"], params["ln1_b"], params["b_ff2"],
                     params["ln2_g"], params["ln2_b"]], axis=1).astype(f32)  # (L,9,D)
    b_f1 = params["b_ff1"].astype(f32).reshape(L, 1, F)
    if apply_final_norm:
        fin = jnp.stack([params["normf_g"], params["normf_b"]], axis=0).astype(f32)

    per_batch = lambda bt, l: (bt, 0, 0)   # constant in l  -> stays in VMEM
    per_layer = lambda bt, l: (l, 0, 0)    # weights of layer l (prefetched)

    in_specs = [pl.BlockSpec((TB, S, D), per_batch),       # src
                pl.BlockSpec((TB, S, D), per_batch)]       # pos
    operands = [x, pos_b]
    if mask_mode == "full":
        in_specs.append(pl.BlockSpec((TB, S, S), per_batch))
        operands.append(add_mask)
    elif mask_mode == "padding":
        in_specs.append(pl.BlockSpec((TB, 1, S), per_batch))
        operands.append(add_mask)
    in_specs += [
        pl.BlockSpec((1, D, 2 * D), per_layer),            # w_qk (fused)
        pl.BlockSpec((1, D, D), per_layer),                # w_v
        pl.BlockSpec((1, D, D), per_layer),                # w_o
        pl.BlockSpec((1, D, F), per_layer),                # w_ff1
        pl.BlockSpec((1, F, D), per_layer),                # w_ff2
        pl.BlockSpec((1, 9, D), per_layer),                # packed D-wide vectors
        pl.BlockSpec((1, 1, F), per_layer),                # b_ff1
    ]
    operands += [w_qk, w_v, w_o, w_f1, w_f2, vec, b_f1]
    if apply_final_norm:
        in_specs.append(pl.BlockSpec((2, D), lambda bt, l: (0, 0)))
        operands.append(fin)

    # ---- VMEM budget (explicit, generation-aware) ---------------------------
    bytes_per_step = (
        2 * (TB * S * D * 4) * 2                       # src + pos (double buffered)
        + (TB * S * D * 4) * 2                         # output block (double buffered)
        + (TB * S * D * 4)                             # ctx scratch
        + 2 * 2 * (2 * D * D + D * D + D * D + D * F + F * D)   # bf16 weights (x2 buf)
        + 2 * 4 * (16 * D + 8 * F + 8 * D)             # packed vectors + final norm
    )
    if mask_mode == "full":
        bytes_per_step += 2 * TB * S * S * 4
    elif mask_mode == "padding":
        bytes_per_step += 2 * TB * 8 * S * 4
    vmem_limit = int(min(max(3 * bytes_per_step, 16 * 1024 * 1024),
                         64 * 1024 * 1024))

    kernel = _make_encoder_kernel(nhead, apply_final_norm, mask_mode)

    out = pl.pallas_call(
        kernel,
        out_shape=jax.ShapeDtypeStruct((B_pad, S, D), f32),
        grid_spec=pltpu.PrefetchScalarGridSpec(
            num_scalar_prefetch=0,
            grid=(B_pad // TB, L),
            in_specs=in_specs,
            out_specs=pl.BlockSpec((TB, S, D), per_batch),
            scratch_shapes=[pltpu.VMEM((TB, S, D), jnp.float32)],
        ),
        compiler_params=pltpu.CompilerParams(
            dimension_semantics=("parallel", "arbitrary"),
            vmem_limit_bytes=vmem_limit),
        input_output_aliases={0: 0},                    # donate src buffer
    )(*operands)

    out = out[:B]
    return jnp.transpose(out, (1, 0, 2))                               # -> (S, B, D)


# --------------------------------------------------------------------------
# Pure-JAX f32 reference (correctness check only)
# --------------------------------------------------------------------------
def _ref_ln(x, g, b):
    mu = jnp.mean(x, axis=-1, keepdims=True)
    var = jnp.mean((x - mu) ** 2, axis=-1, keepdims=True)
    return (x - mu) / jnp.sqrt(var + LN_EPS) * g + b


def ref_forward(src, params, *, nhead, pos=None, mask=None,
                src_key_padding_mask=None):
    S, B, D = src.shape
    L = params["w_q"].shape[0]
    hd = D // nhead
    x = jnp.transpose(src, (1, 0, 2)).astype(jnp.float32)
    p = (jnp.zeros_like(x) if pos is None
         else jnp.transpose(pos, (1, 0, 2)).astype(jnp.float32))
    add_mask = jnp.zeros((B, 1, S, S), jnp.float32)
    if mask is not None:
        m = jnp.asarray(mask)
        if m.dtype == jnp.bool_:
            m = jnp.where(m, -1e9, 0.0)
        add_mask = add_mask + m.astype(jnp.float32)[None, None]
    if src_key_padding_mask is not None:
        add_mask = add_mask + jnp.where(
            src_key_padding_mask[:, None, None, :], -1e9, 0.0)
    for l in range(L):
        qk_in = x + p
        q = qk_in @ params["w_q"][l] + params["b_q"][l]
        k = qk_in @ params["w_k"][l] + params["b_k"][l]
        v = x @ params["w_v"][l] + params["b_v"][l]
        qh = q.reshape(B, S, nhead, hd).transpose(0, 2, 1, 3)
        kh = k.reshape(B, S, nhead, hd).transpose(0, 2, 1, 3)
        vh = v.reshape(B, S, nhead, hd).transpose(0, 2, 1, 3)
        sc = jnp.einsum("bhqd,bhkd->bhqk", qh, kh) / math.sqrt(hd) + add_mask
        pr = jax.nn.softmax(sc, axis=-1)
        ctx = jnp.einsum("bhqk,bhkd->bhqd", pr, vh)
        ctx = ctx.transpose(0, 2, 1, 3).reshape(B, S, D)
        attn = ctx @ params["w_o"][l] + params["b_o"][l]
        x = _ref_ln(x + attn, params["ln1_g"][l], params["ln1_b"][l])
        ff = jax.nn.relu(x @ params["w_ff1"][l] + params["b_ff1"][l])
        ff = ff @ params["w_ff2"][l] + params["b_ff2"][l]
        x = _ref_ln(x + ff, params["ln2_g"][l], params["ln2_b"][l])
    if "normf_g" in params:
        x = _ref_ln(x, params["normf_g"], params["normf_b"])
    return jnp.transpose(x, (1, 0, 2))


# --------------------------------------------------------------------------
if __name__ == "__main__":
    S, B, D, H, F, L = 16, 2, 32, 4, 64, 2   # seq, batch, d_model, heads, ffn, layers

    keys = jax.random.split(jax.random.PRNGKey(0), 24)
    nrm = lambda k, shp, sc=0.1: sc * jax.random.normal(k, shp, dtype=jnp.float32)

    params = {
        # weights stored as (in, out) so the kernel right-multiplies x @ W
        # (torch nn.Linear keeps (out, in); transpose when loading real weights).
        "w_q": nrm(keys[0], (L, D, D)), "b_q": nrm(keys[1], (L, D)),
        "w_k": nrm(keys[2], (L, D, D)), "b_k": nrm(keys[3], (L, D)),
        "w_v": nrm(keys[4], (L, D, D)), "b_v": nrm(keys[5], (L, D)),
        "w_o": nrm(keys[6], (L, D, D)), "b_o": nrm(keys[7], (L, D)),
        "ln1_g": 1.0 + nrm(keys[8], (L, D)), "ln1_b": nrm(keys[9], (L, D)),
        "w_ff1": nrm(keys[10], (L, D, F)), "b_ff1": nrm(keys[11], (L, F)),
        "w_ff2": nrm(keys[12], (L, F, D)), "b_ff2": nrm(keys[13], (L, D)),
        "ln2_g": 1.0 + nrm(keys[14], (L, D)), "ln2_b": nrm(keys[15], (L, D)),
        # optional final nn.LayerNorm (the `norm` argument of TransformerEncoder)
        "normf_g": 1.0 + nrm(keys[16], (D,)), "normf_b": nrm(keys[17], (D,)),
    }

    src = jax.random.normal(keys[18], (S, B, D), dtype=jnp.float32)   # (S, B, D)
    pos = jax.random.normal(keys[19], (S, B, D), dtype=jnp.float32)

    # bf16 weights in the kernel vs f32 reference -> loose-ish tolerance.
    TOL = dict(atol=2e-2, rtol=2e-2)

    # --- no mask ---
    out = jax.block_until_ready(transformer_encoder_forward(src, params,
                                                            nhead=H, pos=pos))
    ref = jax.block_until_ready(ref_forward(src, params, nhead=H, pos=pos))
    assert out.shape == (S, B, D), out.shape
    err = float(jnp.max(jnp.abs(out - ref)))
    assert jnp.allclose(out, ref, **TOL), f"no-mask max err {err}"

    # --- key-padding mask path ---
    kpm = jnp.zeros((B, S), dtype=bool).at[1, -3:].set(True)
    out2 = jax.block_until_ready(transformer_encoder_forward(
        src, params, nhead=H, pos=pos, src_key_padding_mask=kpm))
    ref2 = jax.block_until_ready(ref_forward(
        src, params, nhead=H, pos=pos, src_key_padding_mask=kpm))
    err2 = float(jnp.max(jnp.abs(out2 - ref2)))
    assert jnp.allclose(out2, ref2, **TOL), f"padding-mask max err {err2}"

    print("KERNEL_OK")
</pallas_src>

<mosaic_0001>
module attributes {stable_mosaic.version = 11 : i64} {
  func.func @kernel(%arg0: i32, %arg1: i32, %arg2: memref<2x16x32xf32, #tpu.memory_space<vmem>>, %arg3: memref<2x16x32xf32, #tpu.memory_space<vmem>>, %arg4: memref<1x32x64xbf16, #tpu.memory_space<vmem>>, %arg5: memref<1x32x32xbf16, #tpu.memory_space<vmem>>, %arg6: memref<1x32x32xbf16, #tpu.memory_space<vmem>>, %arg7: memref<1x32x64xbf16, #tpu.memory_space<vmem>>, %arg8: memref<1x64x32xbf16, #tpu.memory_space<vmem>>, %arg9: memref<1x9x32xf32, #tpu.memory_space<vmem>>, %arg10: memref<1x1x64xf32, #tpu.memory_space<vmem>>, %arg11: memref<2x32xf32, #tpu.memory_space<vmem>>, %arg12: memref<2x16x32xf32, #tpu.memory_space<vmem>>, %arg13: memref<2x16x32xf32, #tpu.memory_space<vmem>>) attributes {dimension_semantics = [#tpu.dimension_semantics<parallel>, #tpu.dimension_semantics<arbitrary>], iteration_bounds = array<i64: 1, 2>, scalar_prefetch = 0 : i64, scratch_operands = 1 : i64, tpu.core_type = #tpu.core_type<tc>, window_params = [{transform_indices = @transform_0, window_bounds = array<i64: 2, 16, 32>}, {transform_indices = @transform_1, window_bounds = array<i64: 2, 16, 32>}, {transform_indices = @transform_2, window_bounds = array<i64: 1, 32, 64>}, {transform_indices = @transform_3, window_bounds = array<i64: 1, 32, 32>}, {transform_indices = @transform_4, window_bounds = array<i64: 1, 32, 32>}, {transform_indices = @transform_5, window_bounds = array<i64: 1, 32, 64>}, {transform_indices = @transform_6, window_bounds = array<i64: 1, 64, 32>}, {transform_indices = @transform_7, window_bounds = array<i64: 1, 9, 32>}, {transform_indices = @transform_8, window_bounds = array<i64: 1, 1, 64>}, {pipeline_mode = #tpu.pipeline_mode<synchronous>, transform_indices = @transform_9, window_bounds = array<i64: 2, 32>}, {transform_indices = @transform_10, window_bounds = array<i64: 2, 16, 32>}]} {
    %c0_i32 = arith.constant 0 : i32
    %0 = arith.cmpi eq, %arg1, %c0_i32 : i32
    %1 = arith.extui %0 : i1 to i32
    %c0_i32_0 = arith.constant 0 : i32
    %2 = arith.cmpi ne, %1, %c0_i32_0 : i32
    scf.if %2 {
      %c0_101 = arith.constant 0 : index
      %c0_102 = arith.constant 0 : index
      %c0_103 = arith.constant 0 : index
      %291 = vector.load %arg2[%c0_101, %c0_102, %c0_103] : memref<2x16x32xf32, #tpu.memory_space<vmem>>, vector<2x16x32xf32>
      %c0_104 = arith.constant 0 : index
      %c0_105 = arith.constant 0 : index
      %c0_106 = arith.constant 0 : index
      %292 = vector.load %arg12[%c0_104, %c0_105, %c0_106] : memref<2x16x32xf32, #tpu.memory_space<vmem>>, vector<2x16x32xf32>
      tpu.vector_store %arg12[%c0_104, %c0_105, %c0_106], %291 {strides = array<i32>} : memref<2x16x32xf32, #tpu.memory_space<vmem>>, vector<2x16x32xf32>,
    } else {
    }
    %c0 = arith.constant 0 : index
    %c0_1 = arith.constant 0 : index
    %c0_2 = arith.constant 0 : index
    %3 = vector.load %arg9[%c0, %c0_1, %c0_2] : memref<1x9x32xf32, #tpu.memory_space<vmem>>, vector<1x9x32xf32>
    %4 = vector.shape_cast %3 : vector<1x9x32xf32> to vector<9x32xf32>
    %5 = vector.extract_strided_slice %4 {offsets = [0, 0], sizes = [1, 32], strides = [1, 1]} : vector<9x32xf32> to vector<1x32xf32>
    %6 = vector.extract_strided_slice %4 {offsets = [1, 0], sizes = [1, 32], strides = [1, 1]} : vector<9x32xf32> to vector<1x32xf32>
    %7 = vector.extract_strided_slice %4 {offsets = [2, 0], sizes = [1, 32], strides = [1, 1]} : vector<9x32xf32> to vector<1x32xf32>
    %8 = vector.extract_strided_slice %4 {offsets = [3, 0], sizes = [1, 32], strides = [1, 1]} : vector<9x32xf32> to vector<1x32xf32>
    %9 = vector.extract_strided_slice %4 {offsets = [4, 0], sizes = [1, 32], strides = [1, 1]} : vector<9x32xf32> to vector<1x32xf32>
    %10 = vector.extract_strided_slice %4 {offsets = [5, 0], sizes = [1, 32], strides = [1, 1]} : vector<9x32xf32> to vector<1x32xf32>
    %11 = vector.extract_strided_slice %4 {offsets = [6, 0], sizes = [1, 32], strides = [1, 1]} : vector<9x32xf32> to vector<1x32xf32>
    %12 = vector.extract_strided_slice %4 {offsets = [7, 0], sizes = [1, 32], strides = [1, 1]} : vector<9x32xf32> to vector<1x32xf32>
    %13 = vector.extract_strided_slice %4 {offsets = [8, 0], sizes = [1, 32], strides = [1, 1]} : vector<9x32xf32> to vector<1x32xf32>
    %c0_3 = arith.constant 0 : index
    %c0_4 = arith.constant 0 : index
    %c0_5 = arith.constant 0 : index
    %14 = vector.load %arg10[%c0_3, %c0_4, %c0_5] : memref<1x1x64xf32, #tpu.memory_space<vmem>>, vector<1x1x64xf32>
    %15 = vector.shape_cast %14 : vector<1x1x64xf32> to vector<1x64xf32>
    %c0_6 = arith.constant 0 : index
    %c0_7 = arith.constant 0 : index
    %c0_8 = arith.constant 0 : index
    %16 = vector.load %arg12[%c0_6, %c0_7, %c0_8] : memref<2x16x32xf32, #tpu.memory_space<vmem>>, vector<2x16x32xf32>
    %17 = vector.shape_cast %16 : vector<2x16x32xf32> to vector<32x32xf32>
    %c0_9 = arith.constant 0 : index
    %c0_10 = arith.constant 0 : index
    %c0_11 = arith.constant 0 : index
    %18 = vector.load %arg3[%c0_9, %c0_10, %c0_11] : memref<2x16x32xf32, #tpu.memory_space<vmem>>, vector<2x16x32xf32>
    %19 = vector.shape_cast %18 : vector<2x16x32xf32> to vector<32x32xf32>
    %20 = arith.addf %17, %19 : vector<32x32xf32>
    %21 = arith.truncf %20 : vector<32x32xf32> to vector<32x32xbf16>
    %c0_12 = arith.constant 0 : index
    %c0_13 = arith.constant 0 : index
    %c0_14 = arith.constant 0 : index
    %22 = vector.load %arg4[%c0_12, %c0_13, %c0_14] : memref<1x32x64xbf16, #tpu.memory_space<vmem>>, vector<1x32x64xbf16>
    %23 = vector.shape_cast %22 : vector<1x32x64xbf16> to vector<32x64xbf16>
    %cst = arith.constant dense<0.000000e+00> : vector<32x64xf32>
    %24 = tpu.matmul %21, %23, %cst {dimension_numbers = #tpu.dot_dimension_numbers<[1], [0], [0], [1], [0, 0, 1, 1], [], []>} : vector<32x32xbf16>, vector<32x64xbf16>, vector<32x64xf32> -> vector<32x64xf32>
    %25 = vector.extract_strided_slice %24 {offsets = [0, 0], sizes = [32, 32], strides = [1, 1]} : vector<32x64xf32> to vector<32x32xf32>
    %26 = vector.broadcast %5 : vector<1x32xf32> to vector<32x32xf32>
    %27 = arith.addf %25, %26 : vector<32x32xf32>
    %cst_15 = arith.constant 0.353553385 : f32
    %28 = vector.broadcast %cst_15 : f32 to vector<32x32xf32>
    %29 = arith.mulf %27, %28 : vector<32x32xf32>
    %30 = vector.extract_strided_slice %24 {offsets = [0, 32], sizes = [32, 32], strides = [1, 1]} : vector<32x64xf32> to vector<32x32xf32>
    %31 = vector.broadcast %6 : vector<1x32xf32> to vector<32x32xf32>
    %32 = arith.addf %30, %31 : vector<32x32xf32>
    %33 = arith.truncf %17 : vector<32x32xf32> to vector<32x32xbf16>
    %c0_16 = arith.constant 0 : index
    %c0_17 = arith.constant 0 : index
    %c0_18 = arith.constant 0 : index
    %34 = vector.load %arg5[%c0_16, %c0_17, %c0_18] : memref<1x32x32xbf16, #tpu.memory_space<vmem>>, vector<1x32x32xbf16>
    %35 = vector.shape_cast %34 : vector<1x32x32xbf16> to vector<32x32xbf16>
    %cst_19 = arith.constant dense<0.000000e+00> : vector<32x32xf32>
    %36 = tpu.matmul %33, %35, %cst_19 {dimension_numbers = #tpu.dot_dimension_numbers<[1], [0], [0], [1], [0, 0, 1, 1], [], []>} : vector<32x32xbf16>, vector<32x32xbf16>, vector<32x32xf32> -> vector<32x32xf32>
    %37 = vector.broadcast %7 : vector<1x32xf32> to vector<32x32xf32>
    %38 = arith.addf %36, %37 : vector<32x32xf32>
    %39 = vector.shape_cast %29 : vector<32x32xf32> to vector<2x16x32xf32>
    %40 = arith.truncf %39 : vector<2x16x32xf32> to vector<2x16x32xbf16>
    %41 = vector.shape_cast %32 : vector<32x32xf32> to vector<2x16x32xf32>
    %42 = arith.truncf %41 : vector<2x16x32xf32> to vector<2x16x32xbf16>
    %43 = vector.shape_cast %38 : vector<32x32xf32> to vector<2x16x32xf32>
    %44 = arith.truncf %43 : vector<2x16x32xf32> to vector<2x16x32xbf16>
    %45 = vector.extract_strided_slice %40 {offsets = [0, 0, 0], sizes = [1, 16, 8], strides = [1, 1, 1]} : vector<2x16x32xbf16> to vector<1x16x8xbf16>
    %46 = vector.shape_cast %45 : vector<1x16x8xbf16> to vector<16x8xbf16>
    %47 = vector.extract_strided_slice %42 {offsets = [0, 0, 0], sizes = [1, 16, 8], strides = [1, 1, 1]} : vector<2x16x32xbf16> to vector<1x16x8xbf16>
    %48 = vector.shape_cast %47 : vector<1x16x8xbf16> to vector<16x8xbf16>
    %cst_20 = arith.constant dense<0.000000e+00> : vector<16x16xf32>
    %49 = tpu.matmul %46, %48, %cst_20 {dimension_numbers = #tpu.dot_dimension_numbers<[1], [1], [0], [0], [0, 0, 1, 0], [], []>} : vector<16x8xbf16>, vector<16x8xbf16>, vector<16x16xf32> -> vector<16x16xf32>
    %cst_21 = arith.constant dense<0xFF800000> : vector<16xf32>
    %50 = vector.multi_reduction <maximumf>, %49, %cst_21 [1] : vector<16x16xf32> to vector<16xf32>
    %51 = vector.shape_cast %50 : vector<16xf32> to vector<16x1xf32>
    %52 = vector.broadcast %51 : vector<16x1xf32> to vector<16x16xf32>
    %53 = arith.subf %49, %52 : vector<16x16xf32>
    %54 = math.exp %53 : vector<16x16xf32>
    %cst_22 = arith.constant dense<0.000000e+00> : vector<16xf32>
    %55 = vector.multi_reduction <add>, %54, %cst_22 [1] : vector<16x16xf32> to vector<16xf32>
    %56 = vector.shape_cast %55 : vector<16xf32> to vector<16x1xf32>
    %57 = tpu.reciprocal %56 {approx = true} : vector<16x1xf32> -> vector<16x1xf32>
    %58 = vector.broadcast %57 : vector<16x1xf32> to vector<16x16xf32>
    %59 = arith.mulf %54, %58 : vector<16x16xf32>
    %60 = arith.truncf %59 : vector<16x16xf32> to vector<16x16xbf16>
    %61 = vector.extract_strided_slice %44 {offsets = [0, 0, 0], sizes = [1, 16, 8], strides = [1, 1, 1]} : vector<2x16x32xbf16> to vector<1x16x8xbf16>
    %62 = vector.shape_cast %61 : vector<1x16x8xbf16> to vector<16x8xbf16>
    %cst_23 = arith.constant dense<0.000000e+00> : vector<16x8xf32>
    %63 = tpu.matmul %60, %62, %cst_23 {dimension_numbers = #tpu.dot_dimension_numbers<[1], [0], [0], [1], [0, 0, 1, 1], [], []>} : vector<16x16xbf16>, vector<16x8xbf16>, vector<16x8xf32> -> vector<16x8xf32>
    %c0_24 = arith.constant 0 : index
    %c0_25 = arith.constant 0 : index
    %c0_26 = arith.constant 0 : index
    %64 = vector.load %arg13[%c0_24, %c0_25, %c0_26] : memref<2x16x32xf32, #tpu.memory_space<vmem>>, vector<1x16x8xf32>
    %65 = vector.shape_cast %64 : vector<1x16x8xf32> to vector<16x8xf32>
    %66 = vector.shape_cast %63 : vector<16x8xf32> to vector<1x16x8xf32>
    tpu.vector_store %arg13[%c0_24, %c0_25, %c0_26], %66 {strides = array<i32>} : memref<2x16x32xf32, #tpu.memory_space<vmem>>, vector<1x16x8xf32>,
    %67 = vector.extract_strided_slice %40 {offsets = [0, 0, 8], sizes = [1, 16, 8], strides = [1, 1, 1]} : vector<2x16x32xbf16> to vector<1x16x8xbf16>
    %68 = vector.shape_cast %67 : vector<1x16x8xbf16> to vector<16x8xbf16>
    %69 = vector.extract_strided_slice %42 {offsets = [0, 0, 8], sizes = [1, 16, 8], strides = [1, 1, 1]} : vector<2x16x32xbf16> to vector<1x16x8xbf16>
    %70 = vector.shape_cast %69 : vector<1x16x8xbf16> to vector<16x8xbf16>
    %cst_27 = arith.constant dense<0.000000e+00> : vector<16x16xf32>
    %71 = tpu.matmul %68, %70, %cst_27 {dimension_numbers = #tpu.dot_dimension_numbers<[1], [1], [0], [0], [0, 0, 1, 0], [], []>} : vector<16x8xbf16>, vector<16x8xbf16>, vector<16x16xf32> -> vector<16x16xf32>
    %cst_28 = arith.constant dense<0xFF800000> : vector<16xf32>
    %72 = vector.multi_reduction <maximumf>, %71, %cst_28 [1] : vector<16x16xf32> to vector<16xf32>
    %73 = vector.shape_cast %72 : vector<16xf32> to vector<16x1xf32>
    %74 = vector.broadcast %73 : vector<16x1xf32> to vector<16x16xf32>
    %75 = arith.subf %71, %74 : vector<16x16xf32>
    %76 = math.exp %75 : vector<16x16xf32>
    %cst_29 = arith.constant dense<0.000000e+00> : vector<16xf32>
    %77 = vector.multi_reduction <add>, %76, %cst_29 [1] : vector<16x16xf32> to vector<16xf32>
    %78 = vector.shape_cast %77 : vector<16xf32> to vector<16x1xf32>
    %79 = tpu.reciprocal %78 {approx = true} : vector<16x1xf32> -> vector<16x1xf32>
    %80 = vector.broadcast %79 : vector<16x1xf32> to vector<16x16xf32>
    %81 = arith.mulf %76, %80 : vector<16x16xf32>
    %82 = arith.truncf %81 : vector<16x16xf32> to vector<16x16xbf16>
    %83 = vector.extract_strided_slice %44 {offsets = [0, 0, 8], sizes = [1, 16, 8], strides = [1, 1, 1]} : vector<2x16x32xbf16> to vector<1x16x8xbf16>
    %84 = vector.shape_cast %83 : vector<1x16x8xbf16> to vector<16x8xbf16>
    %cst_30 = arith.constant dense<0.000000e+00> : vector<16x8xf32>
    %85 = tpu.matmul %82, %84, %cst_30 {dimension_numbers = #tpu.dot_dimension_numbers<[1], [0], [0], [1], [0, 0, 1, 1], [], []>} : vector<16x16xbf16>, vector<16x8xbf16>, vector<16x8xf32> -> vector<16x8xf32>
    %c0_31 = arith.constant 0 : index
    %c0_32 = arith.constant 0 : index
    %c8 = arith.constant 8 : index
    %86 = vector.load %arg13[%c0_31, %c0_32, %c8] : memref<2x16x32xf32, #tpu.memory_space<vmem>>, vector<1x16x8xf32>
    %87 = vector.shape_cast %86 : vector<1x16x8xf32> to vector<16x8xf32>
    %88 = vector.shape_cast %85 : vector<16x8xf32> to vector<1x16x8xf32>
    tpu.vector_store %arg13[%c0_31, %c0_32, %c8], %88 {strides = array<i32>} : memref<2x16x32xf32, #tpu.memory_space<vmem>>, vector<1x16x8xf32>,
    %89 = vector.extract_strided_slice %40 {offsets = [0, 0, 16], sizes = [1, 16, 8], strides = [1, 1, 1]} : vector<2x16x32xbf16> to vector<1x16x8xbf16>
    %90 = vector.shape_cast %89 : vector<1x16x8xbf16> to vector<16x8xbf16>
    %91 = vector.extract_strided_slice %42 {offsets = [0, 0, 16], sizes = [1, 16, 8], strides = [1, 1, 1]} : vector<2x16x32xbf16> to vector<1x16x8xbf16>
    %92 = vector.shape_cast %91 : vector<1x16x8xbf16> to vector<16x8xbf16>
    %cst_33 = arith.constant dense<0.000000e+00> : vector<16x16xf32>
    %93 = tpu.matmul %90, %92, %cst_33 {dimension_numbers = #tpu.dot_dimension_numbers<[1], [1], [0], [0], [0, 0, 1, 0], [], []>} : vector<16x8xbf16>, vector<16x8xbf16>, vector<16x16xf32> -> vector<16x16xf32>
    %cst_34 = arith.constant dense<0xFF800000> : vector<16xf32>
    %94 = vector.multi_reduction <maximumf>, %93, %cst_34 [1] : vector<16x16xf32> to vector<16xf32>
    %95 = vector.shape_cast %94 : vector<16xf32> to vector<16x1xf32>
    %96 = vector.broadcast %95 : vector<16x1xf32> to vector<16x16xf32>
    %97 = arith.subf %93, %96 : vector<16x16xf32>
    %98 = math.exp %97 : vector<16x16xf32>
    %cst_35 = arith.constant dense<0.000000e+00> : vector<16xf32>
    %99 = vector.multi_reduction <add>, %98, %cst_35 [1] : vector<16x16xf32> to vector<16xf32>
    %100 = vector.shape_cast %99 : vector<16xf32> to vector<16x1xf32>
    %101 = tpu.reciprocal %100 {approx = true} : vector<16x1xf32> -> vector<16x1xf32>
    %102 = vector.broadcast %101 : vector<16x1xf32> to vector<16x16xf32>
    %103 = arith.mulf %98, %102 : vector<16x16xf32>
    %104 = arith.truncf %103 : vector<16x16xf32> to vector<16x16xbf16>
    %105 = vector.extract_strided_slice %44 {offsets = [0, 0, 16], sizes = [1, 16, 8], strides = [1, 1, 1]} : vector<2x16x32xbf16> to vector<1x16x8xbf16>
    %106 = vector.shape_cast %105 : vector<1x16x8xbf16> to vector<16x8xbf16>
    %cst_36 = arith.constant dense<0.000000e+00> : vector<16x8xf32>
    %107 = tpu.matmul %104, %106, %cst_36 {dimension_numbers = #tpu.dot_dimension_numbers<[1], [0], [0], [1], [0, 0, 1, 1], [], []>} : vector<16x16xbf16>, vector<16x8xbf16>, vector<16x8xf32> -> vector<16x8xf32>
    %c0_37 = arith.constant 0 : index
    %c0_38 = arith.constant 0 : index
    %c16 = arith.constant 16 : index
    %108 = vector.load %arg13[%c0_37, %c0_38, %c16] : memref<2x16x32xf32, #tpu.memory_space<vmem>>, vector<1x16x8xf32>
    %109 = vector.shape_cast %108 : vector<1x16x8xf32> to vector<16x8xf32>
    %110 = vector.shape_cast %107 : vector<16x8xf32> to vector<1x16x8xf32>
    tpu.vector_store %arg13[%c0_37, %c0_38, %c16], %110 {strides = array<i32>} : memref<2x16x32xf32, #tpu.memory_space<vmem>>, vector<1x16x8xf32>,
    %111 = vector.extract_strided_slice %40 {offsets = [0, 0, 24], sizes = [1, 16, 8], strides = [1, 1, 1]} : vector<2x16x32xbf16> to vector<1x16x8xbf16>
    %112 = vector.shape_cast %111 : vector<1x16x8xbf16> to vector<16x8xbf16>
    %113 = vector.extract_strided_slice %42 {offsets = [0, 0, 24], sizes = [1, 16, 8], strides = [1, 1, 1]} : vector<2x16x32xbf16> to vector<1x16x8xbf16>
    %114 = vector.shape_cast %113 : vector<1x16x8xbf16> to vector<16x8xbf16>
    %cst_39 = arith.constant dense<0.000000e+00> : vector<16x16xf32>
    %115 = tpu.matmul %112, %114, %cst_39 {dimension_numbers = #tpu.dot_dimension_numbers<[1], [1], [0], [0], [0, 0, 1, 0], [], []>} : vector<16x8xbf16>, vector<16x8xbf16>, vector<16x16xf32> -> vector<16x16xf32>
    %cst_40 = arith.constant dense<0xFF800000> : vector<16xf32>
    %116 = vector.multi_reduction <maximumf>, %115, %cst_40 [1] : vector<16x16xf32> to vector<16xf32>
    %117 = vector.shape_cast %116 : vector<16xf32> to vector<16x1xf32>
    %118 = vector.broadcast %117 : vector<16x1xf32> to vector<16x16xf32>
    %119 = arith.subf %115, %118 : vector<16x16xf32>
    %120 = math.exp %119 : vector<16x16xf32>
    %cst_41 = arith.constant dense<0.000000e+00> : vector<16xf32>
    %121 = vector.multi_reduction <add>, %120, %cst_41 [1] : vector<16x16xf32> to vector<16xf32>
    %122 = vector.shape_cast %121 : vector<16xf32> to vector<16x1xf32>
    %123 = tpu.reciprocal %122 {approx = true} : vector<16x1xf32> -> vector<16x1xf32>
    %124 = vector.broadcast %123 : vector<16x1xf32> to vector<16x16xf32>
    %125 = arith.mulf %120, %124 : vector<16x16xf32>
    %126 = arith.truncf %125 : vector<16x16xf32> to vector<16x16xbf16>
    %127 = vector.extract_strided_slice %44 {offsets = [0, 0, 24], sizes = [1, 16, 8], strides = [1, 1, 1]} : vector<2x16x32xbf16> to vector<1x16x8xbf16>
    %128 = vector.shape_cast %127 : vector<1x16x8xbf16> to vector<16x8xbf16>
    %cst_42 = arith.constant dense<0.000000e+00> : vector<16x8xf32>
    %129 = tpu.matmul %126, %128, %cst_42 {dimension_numbers = #tpu.dot_dimension_numbers<[1], [0], [0], [1], [0, 0, 1, 1], [], []>} : vector<16x16xbf16>, vector<16x8xbf16>, vector<16x8xf32> -> vector<16x8xf32>
    %c0_43 = arith.constant 0 : index
    %c0_44 = arith.constant 0 : index
    %c24 = arith.constant 24 : index
    %130 = vector.load %arg13[%c0_43, %c0_44, %c24] : memref<2x16x32xf32, #tpu.memory_space<vmem>>, vector<1x16x8xf32>
    %131 = vector.shape_cast %130 : vector<1x16x8xf32> to vector<16x8xf32>
    %132 = vector.shape_cast %129 : vector<16x8xf32> to vector<1x16x8xf32>
    tpu.vector_store %arg13[%c0_43, %c0_44, %c24], %132 {strides = array<i32>} : memref<2x16x32xf32, #tpu.memory_space<vmem>>, vector<1x16x8xf32>,
    %133 = vector.extract_strided_slice %40 {offsets = [1, 0, 0], sizes = [1, 16, 8], strides = [1, 1, 1]} : vector<2x16x32xbf16> to vector<1x16x8xbf16>
    %134 = vector.shape_cast %133 : vector<1x16x8xbf16> to vector<16x8xbf16>
    %135 = vector.extract_strided_slice %42 {offsets = [1, 0, 0], sizes = [1, 16, 8], strides = [1, 1, 1]} : vector<2x16x32xbf16> to vector<1x16x8xbf16>
    %136 = vector.shape_cast %135 : vector<1x16x8xbf16> to vector<16x8xbf16>
    %cst_45 = arith.constant dense<0.000000e+00> : vector<16x16xf32>
    %137 = tpu.matmul %134, %136, %cst_45 {dimension_numbers = #tpu.dot_dimension_numbers<[1], [1], [0], [0], [0, 0, 1, 0], [], []>} : vector<16x8xbf16>, vector<16x8xbf16>, vector<16x16xf32> -> vector<16x16xf32>
    %cst_46 = arith.constant dense<0xFF800000> : vector<16xf32>
    %138 = vector.multi_reduction <maximumf>, %137, %cst_46 [1] : vector<16x16xf32> to vector<16xf32>
    %139 = vector.shape_cast %138 : vector<16xf32> to vector<16x1xf32>
    %140 = vector.broadcast %139 : vector<16x1xf32> to vector<16x16xf32>
    %141 = arith.subf %137, %140 : vector<16x16xf32>
    %142 = math.exp %141 : vector<16x16xf32>
    %cst_47 = arith.constant dense<0.000000e+00> : vector<16xf32>
    %143 = vector.multi_reduction <add>, %142, %cst_47 [1] : vector<16x16xf32> to vector<16xf32>
    %144 = vector.shape_cast %143 : vector<16xf32> to vector<16x1xf32>
    %145 = tpu.reciprocal %144 {approx = true} : vector<16x1xf32> -> vector<16x1xf32>
    %146 = vector.broadcast %145 : vector<16x1xf32> to vector<16x16xf32>
    %147 = arith.mulf %142, %146 : vector<16x16xf32>
    %148 = arith.truncf %147 : vector<16x16xf32> to vector<16x16xbf16>
    %149 = vector.extract_strided_slice %44 {offsets = [1, 0, 0], sizes = [1, 16, 8], strides = [1, 1, 1]} : vector<2x16x32xbf16> to vector<1x16x8xbf16>
    %150 = vector.shape_cast %149 : vector<1x16x8xbf16> to vector<16x8xbf16>
    %cst_48 = arith.constant dense<0.000000e+00> : vector<16x8xf32>
    %151 = tpu.matmul %148, %150, %cst_48 {dimension_numbers = #tpu.dot_dimension_numbers<[1], [0], [0], [1], [0, 0, 1, 1], [], []>} : vector<16x16xbf16>, vector<16x8xbf16>, vector<16x8xf32> -> vector<16x8xf32>
    %c1 = arith.constant 1 : index
    %c0_49 = arith.constant 0 : index
    %c0_50 = arith.constant 0 : index
    %152 = vector.load %arg13[%c1, %c0_49, %c0_50] : memref<2x16x32xf32, #tpu.memory_space<vmem>>, vector<1x16x8xf32>
    %153 = vector.shape_cast %152 : vector<1x16x8xf32> to vector<16x8xf32>
    %154 = vector.shape_cast %151 : vector<16x8xf32> to vector<1x16x8xf32>
    tpu.vector_store %arg13[%c1, %c0_49, %c0_50], %154 {strides = array<i32>} : memref<2x16x32xf32, #tpu.memory_space<vmem>>, vector<1x16x8xf32>,
    %155 = vector.extract_strided_slice %40 {offsets = [1, 0, 8], sizes = [1, 16, 8], strides = [1, 1, 1]} : vector<2x16x32xbf16> to vector<1x16x8xbf16>
    %156 = vector.shape_cast %155 : vector<1x16x8xbf16> to vector<16x8xbf16>
    %157 = vector.extract_strided_slice %42 {offsets = [1, 0, 8], sizes = [1, 16, 8], strides = [1, 1, 1]} : vector<2x16x32xbf16> to vector<1x16x8xbf16>
    %158 = vector.shape_cast %157 : vector<1x16x8xbf16> to vector<16x8xbf16>
    %cst_51 = arith.constant dense<0.000000e+00> : vector<16x16xf32>
    %159 = tpu.matmul %156, %158, %cst_51 {dimension_numbers = #tpu.dot_dimension_numbers<[1], [1], [0], [0], [0, 0, 1, 0], [], []>} : vector<16x8xbf16>, vector<16x8xbf16>, vector<16x16xf32> -> vector<16x16xf32>
    %cst_52 = arith.constant dense<0xFF800000> : vector<16xf32>
    %160 = vector.multi_reduction <maximumf>, %159, %cst_52 [1] : vector<16x16xf32> to vector<16xf32>
    %161 = vector.shape_cast %160 : vector<16xf32> to vector<16x1xf32>
    %162 = vector.broadcast %161 : vector<16x1xf32> to vector<16x16xf32>
    %163 = arith.subf %159, %162 : vector<16x16xf32>
    %164 = math.exp %163 : vector<16x16xf32>
    %cst_53 = arith.constant dense<0.000000e+00> : vector<16xf32>
    %165 = vector.multi_reduction <add>, %164, %cst_53 [1] : vector<16x16xf32> to vector<16xf32>
    %166 = vector.shape_cast %165 : vector<16xf32> to vector<16x1xf32>
    %167 = tpu.reciprocal %166 {approx = true} : vector<16x1xf32> -> vector<16x1xf32>
    %168 = vector.broadcast %167 : vector<16x1xf32> to vector<16x16xf32>
    %169 = arith.mulf %164, %168 : vector<16x16xf32>
    %170 = arith.truncf %169 : vector<16x16xf32> to vector<16x16xbf16>
    %171 = vector.extract_strided_slice %44 {offsets = [1, 0, 8], sizes = [1, 16, 8], strides = [1, 1, 1]} : vector<2x16x32xbf16> to vector<1x16x8xbf16>
    %172 = vector.shape_cast %171 : vector<1x16x8xbf16> to vector<16x8xbf16>
    %cst_54 = arith.constant dense<0.000000e+00> : vector<16x8xf32>
    %173 = tpu.matmul %170, %172, %cst_54 {dimension_numbers = #tpu.dot_dimension_numbers<[1], [0], [0], [1], [0, 0, 1, 1], [], []>} : vector<16x16xbf16>, vector<16x8xbf16>, vector<16x8xf32> -> vector<16x8xf32>
    %c1_55 = arith.constant 1 : index
    %c0_56 = arith.constant 0 : index
    %c8_57 = arith.constant 8 : index
    %174 = vector.load %arg13[%c1_55, %c0_56, %c8_57] : memref<2x16x32xf32, #tpu.memory_space<vmem>>, vector<1x16x8xf32>
    %175 = vector.shape_cast %174 : vector<1x16x8xf32> to vector<16x8xf32>
    %176 = vector.shape_cast %173 : vector<16x8xf32> to vector<1x16x8xf32>
    tpu.vector_store %arg13[%c1_55, %c0_56, %c8_57], %176 {strides = array<i32>} : memref<2x16x32xf32, #tpu.memory_space<vmem>>, vector<1x16x8xf32>,
    %177 = vector.extract_strided_slice %40 {offsets = [1, 0, 16], sizes = [1, 16, 8], strides = [1, 1, 1]} : vector<2x16x32xbf16> to vector<1x16x8xbf16>
    %178 = vector.shape_cast %177 : vector<1x16x8xbf16> to vector<16x8xbf16>
    %179 = vector.extract_strided_slice %42 {offsets = [1, 0, 16], sizes = [1, 16, 8], strides = [1, 1, 1]} : vector<2x16x32xbf16> to vector<1x16x8xbf16>
    %180 = vector.shape_cast %179 : vector<1x16x8xbf16> to vector<16x8xbf16>
    %cst_58 = arith.constant dense<0.000000e+00> : vector<16x16xf32>
    %181 = tpu.matmul %178, %180, %cst_58 {dimension_numbers = #tpu.dot_dimension_numbers<[1], [1], [0], [0], [0, 0, 1, 0], [], []>} : vector<16x8xbf16>, vector<16x8xbf16>, vector<16x16xf32> -> vector<16x16xf32>
    %cst_59 = arith.constant dense<0xFF800000> : vector<16xf32>
    %182 = vector.multi_reduction <maximumf>, %181, %cst_59 [1] : vector<16x16xf32> to vector<16xf32>
    %183 = vector.shape_cast %182 : vector<16xf32> to vector<16x1xf32>
    %184 = vector.broadcast %183 : vector<16x1xf32> to vector<16x16xf32>
    %185 = arith.subf %181, %184 : vector<16x16xf32>
    %186 = math.exp %185 : vector<16x16xf32>
    %cst_60 = arith.constant dense<0.000000e+00> : vector<16xf32>
    %187 = vector.multi_reduction <add>, %186, %cst_60 [1] : vector<16x16xf32> to vector<16xf32>
    %188 = vector.shape_cast %187 : vector<16xf32> to vector<16x1xf32>
    %189 = tpu.reciprocal %188 {approx = true} : vector<16x1xf32> -> vector<16x1xf32>
    %190 = vector.broadcast %189 : vector<16x1xf32> to vector<16x16xf32>
    %191 = arith.mulf %186, %190 : vector<16x16xf32>
    %192 = arith.truncf %191 : vector<16x16xf32> to vector<16x16xbf16>
    %193 = vector.extract_strided_slice %44 {offsets = [1, 0, 16], sizes = [1, 16, 8], strides = [1, 1, 1]} : vector<2x16x32xbf16> to vector<1x16x8xbf16>
    %194 = vector.shape_cast %193 : vector<1x16x8xbf16> to vector<16x8xbf16>
    %cst_61 = arith.constant dense<0.000000e+00> : vector<16x8xf32>
    %195 = tpu.matmul %192, %194, %cst_61 {dimension_numbers = #tpu.dot_dimension_numbers<[1], [0], [0], [1], [0, 0, 1, 1], [], []>} : vector<16x16xbf16>, vector<16x8xbf16>, vector<16x8xf32> -> vector<16x8xf32>
    %c1_62 = arith.constant 1 : index
    %c0_63 = arith.constant 0 : index
    %c16_64 = arith.constant 16 : index
    %196 = vector.load %arg13[%c1_62, %c0_63, %c16_64] : memref<2x16x32xf32, #tpu.memory_space<vmem>>, vector<1x16x8xf32>
    %197 = vector.shape_cast %196 : vector<1x16x8xf32> to vector<16x8xf32>
    %198 = vector.shape_cast %195 : vector<16x8xf32> to vector<1x16x8xf32>
    tpu.vector_store %arg13[%c1_62, %c0_63, %c16_64], %198 {strides = array<i32>} : memref<2x16x32xf32, #tpu.memory_space<vmem>>, vector<1x16x8xf32>,
    %199 = vector.extract_strided_slice %40 {offsets = [1, 0, 24], sizes = [1, 16, 8], strides = [1, 1, 1]} : vector<2x16x32xbf16> to vector<1x16x8xbf16>
    %200 = vector.shape_cast %199 : vector<1x16x8xbf16> to vector<16x8xbf16>
    %201 = vector.extract_strided_slice %42 {offsets = [1, 0, 24], sizes = [1, 16, 8], strides = [1, 1, 1]} : vector<2x16x32xbf16> to vector<1x16x8xbf16>
    %202 = vector.shape_cast %201 : vector<1x16x8xbf16> to vector<16x8xbf16>
    %cst_65 = arith.constant dense<0.000000e+00> : vector<16x16xf32>
    %203 = tpu.matmul %200, %202, %cst_65 {dimension_numbers = #tpu.dot_dimension_numbers<[1], [1], [0], [0], [0, 0, 1, 0], [], []>} : vector<16x8xbf16>, vector<16x8xbf16>, vector<16x16xf32> -> vector<16x16xf32>
    %cst_66 = arith.constant dense<0xFF800000> : vector<16xf32>
    %204 = vector.multi_reduction <maximumf>, %203, %cst_66 [1] : vector<16x16xf32> to vector<16xf32>
    %205 = vector.shape_cast %204 : vector<16xf32> to vector<16x1xf32>
    %206 = vector.broadcast %205 : vector<16x1xf32> to vector<16x16xf32>
    %207 = arith.subf %203, %206 : vector<16x16xf32>
    %208 = math.exp %207 : vector<16x16xf32>
    %cst_67 = arith.constant dense<0.000000e+00> : vector<16xf32>
    %209 = vector.multi_reduction <add>, %208, %cst_67 [1] : vector<16x16xf32> to vector<16xf32>
    %210 = vector.shape_cast %209 : vector<16xf32> to vector<16x1xf32>
    %211 = tpu.reciprocal %210 {approx = true} : vector<16x1xf32> -> vector<16x1xf32>
    %212 = vector.broadcast %211 : vector<16x1xf32> to vector<16x16xf32>
    %213 = arith.mulf %208, %212 : vector<16x16xf32>
    %214 = arith.truncf %213 : vector<16x16xf32> to vector<16x16xbf16>
    %215 = vector.extract_strided_slice %44 {offsets = [1, 0, 24], sizes = [1, 16, 8], strides = [1, 1, 1]} : vector<2x16x32xbf16> to vector<1x16x8xbf16>
    %216 = vector.shape_cast %215 : vector<1x16x8xbf16> to vector<16x8xbf16>
    %cst_68 = arith.constant dense<0.000000e+00> : vector<16x8xf32>
    %217 = tpu.matmul %214, %216, %cst_68 {dimension_numbers = #tpu.dot_dimension_numbers<[1], [0], [0], [1], [0, 0, 1, 1], [], []>} : vector<16x16xbf16>, vector<16x8xbf16>, vector<16x8xf32> -> vector<16x8xf32>
    %c1_69 = arith.constant 1 : index
    %c0_70 = arith.constant 0 : index
    %c24_71 = arith.constant 24 : index
    %218 = vector.load %arg13[%c1_69, %c0_70, %c24_71] : memref<2x16x32xf32, #tpu.memory_space<vmem>>, vector<1x16x8xf32>
    %219 = vector.shape_cast %218 : vector<1x16x8xf32> to vector<16x8xf32>
    %220 = vector.shape_cast %217 : vector<16x8xf32> to vector<1x16x8xf32>
    tpu.vector_store %arg13[%c1_69, %c0_70, %c24_71], %220 {strides = array<i32>} : memref<2x16x32xf32, #tpu.memory_space<vmem>>, vector<1x16x8xf32>,
    %c0_72 = arith.constant 0 : index
    %c0_73 = arith.constant 0 : index
    %c0_74 = arith.constant 0 : index
    %221 = vector.load %arg13[%c0_72, %c0_73, %c0_74] : memref<2x16x32xf32, #tpu.memory_space<vmem>>, vector<2x16x32xf32>
    %222 = vector.shape_cast %221 : vector<2x16x32xf32> to vector<32x32xf32>
    %223 = arith.truncf %222 : vector<32x32xf32> to vector<32x32xbf16>
    %c0_75 = arith.constant 0 : index
    %c0_76 = arith.constant 0 : index
    %c0_77 = arith.constant 0 : index
    %224 = vector.load %arg6[%c0_75, %c0_76, %c0_77] : memref<1x32x32xbf16, #tpu.memory_space<vmem>>, vector<1x32x32xbf16>
    %225 = vector.shape_cast %224 : vector<1x32x32xbf16> to vector<32x32xbf16>
    %cst_78 = arith.constant dense<0.000000e+00> : vector<32x32xf32>
    %226 = tpu.matmul %223, %225, %cst_78 {dimension_numbers = #tpu.dot_dimension_numbers<[1], [0], [0], [1], [0, 0, 1, 1], [], []>} : vector<32x32xbf16>, vector<32x32xbf16>, vector<32x32xf32> -> vector<32x32xf32>
    %227 = vector.broadcast %8 : vector<1x32xf32> to vector<32x32xf32>
    %228 = arith.addf %226, %227 : vector<32x32xf32>
    %229 = arith.addf %17, %228 : vector<32x32xf32>
    %cst_79 = arith.constant dense<0.000000e+00> : vector<32xf32>
    %230 = vector.multi_reduction <add>, %229, %cst_79 [1] : vector<32x32xf32> to vector<32xf32>
    %231 = vector.shape_cast %230 : vector<32xf32> to vector<32x1xf32>
    %cst_80 = arith.constant 3.200000e+01 : f32
    %232 = vector.broadcast %cst_80 : f32 to vector<32x1xf32>
    %233 = arith.divf %231, %232 : vector<32x1xf32>
    %234 = vector.broadcast %233 : vector<32x1xf32> to vector<32x32xf32>
    %235 = arith.subf %229, %234 : vector<32x32xf32>
    %236 = arith.mulf %235, %235 : vector<32x32xf32>
    %cst_81 = arith.constant dense<0.000000e+00> : vector<32xf32>
    %237 = vector.multi_reduction <add>, %236, %cst_81 [1] : vector<32x32xf32> to vector<32xf32>
    %238 = vector.shape_cast %237 : vector<32xf32> to vector<32x1xf32>
    %cst_82 = arith.constant 3.200000e+01 : f32
    %239 = vector.broadcast %cst_82 : f32 to vector<32x1xf32>
    %240 = arith.divf %238, %239 : vector<32x1xf32>
    %cst_83 = arith.constant 9.99999974E-6 : f32
    %241 = vector.broadcast %cst_83 : f32 to vector<32x1xf32>
    %242 = arith.addf %240, %241 : vector<32x1xf32>
    %243 = math.rsqrt %242 : vector<32x1xf32>
    %244 = vector.broadcast %243 : vector<32x1xf32> to vector<32x32xf32>
    %245 = arith.mulf %235, %244 : vector<32x32xf32>
    %246 = vector.broadcast %9 : vector<1x32xf32> to vector<32x32xf32>
    %247 = arith.mulf %245, %246 : vector<32x32xf32>
    %248 = vector.broadcast %10 : vector<1x32xf32> to vector<32x32xf32>
    %249 = arith.addf %247, %248 : vector<32x32xf32>
    %250 = arith.truncf %249 : vector<32x32xf32> to vector<32x32xbf16>
    %c0_84 = arith.constant 0 : index
    %c0_85 = arith.constant 0 : index
    %c0_86 = arith.constant 0 : index
    %251 = vector.load %arg7[%c0_84, %c0_85, %c0_86] : memref<1x32x64xbf16, #tpu.memory_space<vmem>>, vector<1x32x64xbf16>
    %252 = vector.shape_cast %251 : vector<1x32x64xbf16> to vector<32x64xbf16>
    %cst_87 = arith.constant dense<0.000000e+00> : vector<32x64xf32>
    %253 = tpu.matmul %250, %252, %cst_87 {dimension_numbers = #tpu.dot_dimension_numbers<[1], [0], [0], [1], [0, 0, 1, 1], [], []>} : vector<32x32xbf16>, vector<32x64xbf16>, vector<32x64xf32> -> vector<32x64xf32>
    %254 = vector.broadcast %15 : vector<1x64xf32> to vector<32x64xf32>
    %255 = arith.addf %253, %254 : vector<32x64xf32>
    %cst_88 = arith.constant 0.000000e+00 : f32
    %256 = vector.broadcast %cst_88 : f32 to vector<32x64xf32>
    %257 = arith.maximumf %255, %256 : vector<32x64xf32>
    %258 = arith.truncf %257 : vector<32x64xf32> to vector<32x64xbf16>
    %c0_89 = arith.constant 0 : index
    %c0_90 = arith.constant 0 : index
    %c0_91 = arith.constant 0 : index
    %259 = vector.load %arg8[%c0_89, %c0_90, %c0_91] : memref<1x64x32xbf16, #tpu.memory_space<vmem>>, vector<1x64x32xbf16>
    %260 = vector.shape_cast %259 : vector<1x64x32xbf16> to vector<64x32xbf16>
    %cst_92 = arith.constant dense<0.000000e+00> : vector<32x32xf32>
    %261 = tpu.matmul %258, %260, %cst_92 {dimension_numbers = #tpu.dot_dimension_numbers<[1], [0], [0], [1], [0, 0, 1, 1], [], []>} : vector<32x64xbf16>, vector<64x32xbf16>, vector<32x32xf32> -> vector<32x32xf32>
    %262 = vector.broadcast %11 : vector<1x32xf32> to vector<32x32xf32>
    %263 = arith.addf %261, %262 : vector<32x32xf32>
    %264 = arith.addf %249, %263 : vector<32x32xf32>
    %cst_93 = arith.constant dense<0.000000e+00> : vector<32xf32>
    %265 = vector.multi_reduction <add>, %264, %cst_93 [1] : vector<32x32xf32> to vector<32xf32>
    %266 = vector.shape_cast %265 : vector<32xf32> to vector<32x1xf32>
    %cst_94 = arith.constant 3.200000e+01 : f32
    %267 = vector.broadcast %cst_94 : f32 to vector<32x1xf32>
    %268 = arith.divf %266, %267 : vector<32x1xf32>
    %269 = vector.broadcast %268 : vector<32x1xf32> to vector<32x32xf32>
    %270 = arith.subf %264, %269 : vector<32x32xf32>
    %271 = arith.mulf %270, %270 : vector<32x32xf32>
    %cst_95 = arith.constant dense<0.000000e+00> : vector<32xf32>
    %272 = vector.multi_reduction <add>, %271, %cst_95 [1] : vector<32x32xf32> to vector<32xf32>
    %273 = vector.shape_cast %272 : vector<32xf32> to vector<32x1xf32>
    %cst_96 = arith.constant 3.200000e+01 : f32
    %274 = vector.broadcast %cst_96 : f32 to vector<32x1xf32>
    %275 = arith.divf %273, %274 : vector<32x1xf32>
    %cst_97 = arith.constant 9.99999974E-6 : f32
    %276 = vector.broadcast %cst_97 : f32 to vector<32x1xf32>
    %277 = arith.addf %275, %276 : vector<32x1xf32>
    %278 = math.rsqrt %277 : vector<32x1xf32>
    %279 = vector.broadcast %278 : vector<32x1xf32> to vector<32x32xf32>
    %280 = arith.mulf %270, %279 : vector<32x32xf32>
    %281 = vector.broadcast %12 : vector<1x32xf32> to vector<32x32xf32>
    %282 = arith.mulf %280, %281 : vector<32x32xf32>
    %283 = vector.broadcast %13 : vector<1x32xf32> to vector<32x32xf32>
    %284 = arith.addf %282, %283 : vector<32x32xf32>
    %c1_i32 = arith.constant 1 : i32
    %285 = arith.cmpi ne, %arg1, %c1_i32 : i32
    %286 = arith.extui %285 : i1 to i32
    %c0_i32_98 = arith.constant 0 : i32
    %287 = arith.cmpi ne, %286, %c0_i32_98 : i32
    scf.if %287 {
      %291 = vector.shape_cast %284 : vector<32x32xf32> to vector<2x16x32xf32>
      %c0_101 = arith.constant 0 : index
      %c0_102 = arith.constant 0 : index
      %c0_103 = arith.constant 0 : index
      %292 = vector.load %arg12[%c0_101, %c0_102, %c0_103] : memref<2x16x32xf32, #tpu.memory_space<vmem>>, vector<2x16x32xf32>
      tpu.vector_store %arg12[%c0_101, %c0_102, %c0_103], %291 {strides = array<i32>} : memref<2x16x32xf32, #tpu.memory_space<vmem>>, vector<2x16x32xf32>,
    } else {
    }
    %c1_i32_99 = arith.constant 1 : i32
    %288 = arith.cmpi eq, %arg1, %c1_i32_99 : i32
    %289 = arith.extui %288 : i1 to i32
    %c0_i32_100 = arith.constant 0 : i32
    %290 = arith.cmpi ne, %289, %c0_i32_100 : i32
    scf.if %290 {
      %c0_101 = arith.constant 0 : index
      %c0_102 = arith.constant 0 : index
      %291 = vector.load %arg11[%c0_101, %c0_102] : memref<2x32xf32, #tpu.memory_space<vmem>>, vector<1x32xf32>
      %c1_103 = arith.constant 1 : index
      %c0_104 = arith.constant 0 : index
      %292 = vector.load %arg11[%c1_103, %c0_104] : memref<2x32xf32, #tpu.memory_space<vmem>>, vector<1x32xf32>
      %cst_105 = arith.constant dense<0.000000e+00> : vector<32xf32>
      %293 = vector.multi_reduction <add>, %284, %cst_105 [1] : vector<32x32xf32> to vector<32xf32>
      %294 = vector.shape_cast %293 : vector<32xf32> to vector<32x1xf32>
      %cst_106 = arith.constant 3.200000e+01 : f32
      %295 = vector.broadcast %cst_106 : f32 to vector<32x1xf32>
      %296 = arith.divf %294, %295 : vector<32x1xf32>
      %297 = vector.broadcast %296 : vector<32x1xf32> to vector<32x32xf32>
      %298 = arith.subf %284, %297 : vector<32x32xf32>
      %299 = arith.mulf %298, %298 : vector<32x32xf32>
      %cst_107 = arith.constant dense<0.000000e+00> : vector<32xf32>
      %300 = vector.multi_reduction <add>, %299, %cst_107 [1] : vector<32x32xf32> to vector<32xf32>
      %301 = vector.shape_cast %300 : vector<32xf32> to vector<32x1xf32>
      %cst_108 = arith.constant 3.200000e+01 : f32
      %302 = vector.broadcast %cst_108 : f32 to vector<32x1xf32>
      %303 = arith.divf %301, %302 : vector<32x1xf32>
      %cst_109 = arith.constant 9.99999974E-6 : f32
      %304 = vector.broadcast %cst_109 : f32 to vector<32x1xf32>
      %305 = arith.addf %303, %304 : vector<32x1xf32>
      %306 = math.rsqrt %305 : vector<32x1xf32>
      %307 = vector.broadcast %306 : vector<32x1xf32> to vector<32x32xf32>
      %308 = arith.mulf %298, %307 : vector<32x32xf32>
      %309 = vector.broadcast %291 : vector<1x32xf32> to vector<32x32xf32>
      %310 = arith.mulf %308, %309 : vector<32x32xf32>
      %311 = vector.broadcast %292 : vector<1x32xf32> to vector<32x32xf32>
      %312 = arith.addf %310, %311 : vector<32x32xf32>
      %313 = vector.shape_cast %312 : vector<32x32xf32> to vector<2x16x32xf32>
      %c0_110 = arith.constant 0 : index
      %c0_111 = arith.constant 0 : index
      %c0_112 = arith.constant 0 : index
      %314 = vector.load %arg12[%c0_110, %c0_111, %c0_112] : memref<2x16x32xf32, #tpu.memory_space<vmem>>, vector<2x16x32xf32>
      tpu.vector_store %arg12[%c0_110, %c0_111, %c0_112], %313 {strides = array<i32>} : memref<2x16x32xf32, #tpu.memory_space<vmem>>, vector<2x16x32xf32>,
    } else {
    }
    return
  }
  func.func @transform_0(%arg0: i32, %arg1: i32) -> (i32, i32, i32) {
    %c0_i32 = arith.constant 0 : i32
    %c0_i32_0 = arith.constant 0 : i32
    %c0_i32_1 = arith.constant 0 : i32
    return %arg0, %c0_i32, %c0_i32_0 : i32, i32, i32
  }
  func.func @transform_1(%arg0: i32, %arg1: i32) -> (i32, i32, i32) {
    %c0_i32 = arith.constant 0 : i32
    %c0_i32_0 = arith.constant 0 : i32
    %c0_i32_1 = arith.constant 0 : i32
    return %arg0, %c0_i32, %c0_i32_0 : i32, i32, i32
  }
  func.func @transform_2(%arg0: i32, %arg1: i32) -> (i32, i32, i32) {
    %c0_i32 = arith.constant 0 : i32
    %c0_i32_0 = arith.constant 0 : i32
    %c0_i32_1 = arith.constant 0 : i32
    return %arg1, %c0_i32, %c0_i32_0 : i32, i32, i32
  }
  func.func @transform_3(%arg0: i32, %arg1: i32) -> (i32, i32, i32) {
    %c0_i32 = arith.constant 0 : i32
    %c0_i32_0 = arith.constant 0 : i32
    %c0_i32_1 = arith.constant 0 : i32
    return %arg1, %c0_i32, %c0_i32_0 : i32, i32, i32
  }
  func.func @transform_4(%arg0: i32, %arg1: i32) -> (i32, i32, i32) {
    %c0_i32 = arith.constant 0 : i32
    %c0_i32_0 = arith.constant 0 : i32
    %c0_i32_1 = arith.constant 0 : i32
    return %arg1, %c0_i32, %c0_i32_0 : i32, i32, i32
  }
  func.func @transform_5(%arg0: i32, %arg1: i32) -> (i32, i32, i32) {
    %c0_i32 = arith.constant 0 : i32
    %c0_i32_0 = arith.constant 0 : i32
    %c0_i32_1 = arith.constant 0 : i32
    return %arg1, %c0_i32, %c0_i32_0 : i32, i32, i32
  }
  func.func @transform_6(%arg0: i32, %arg1: i32) -> (i32, i32, i32) {
    %c0_i32 = arith.constant 0 : i32
    %c0_i32_0 = arith.constant 0 : i32
    %c0_i32_1 = arith.constant 0 : i32
    return %arg1, %c0_i32, %c0_i32_0 : i32, i32, i32
  }
  func.func @transform_7(%arg0: i32, %arg1: i32) -> (i32, i32, i32) {
    %c0_i32 = arith.constant 0 : i32
    %c0_i32_0 = arith.constant 0 : i32
    %c0_i32_1 = arith.constant 0 : i32
    return %arg1, %c0_i32, %c0_i32_0 : i32, i32, i32
  }
  func.func @transform_8(%arg0: i32, %arg1: i32) -> (i32, i32, i32) {
    %c0_i32 = arith.constant 0 : i32
    %c0_i32_0 = arith.constant 0 : i32
    %c0_i32_1 = arith.constant 0 : i32
    return %arg1, %c0_i32, %c0_i32_0 : i32, i32, i32
  }
  func.func @transform_9(%arg0: i32, %arg1: i32) -> (i32, i32) {
    %c0_i32 = arith.constant 0 : i32
    %c0_i32_0 = arith.constant 0 : i32
    %c0_i32_1 = arith.constant 0 : i32
    return %c0_i32, %c0_i32_0 : i32, i32
  }
  func.func @transform_10(%arg0: i32, %arg1: i32) -> (i32, i32, i32) {
    %c0_i32 = arith.constant 0 : i32
    %c0_i32_0 = arith.constant 0 : i32
    %c0_i32_1 = arith.constant 0 : i32
    return %arg0, %c0_i32, %c0_i32_0 : i32, i32, i32
  }
}

</mosaic_0001>

<bundles_post_ra>
// kernel: tpu_custom_call.1
= control target key start
LH: loop header
LB: loop body
LE: loop exit
PB: predicated region body
PF: predicated region fallthrough
CT: control target
= control target key end

     0   :  { %s3518_s0 = inlined_call_operand.hbm [shape: f32[2,16,32], index: 0, kind: input, shape index: {}, may-alias: {0,10}]   ;;  %s3519_s1 = inlined_call_operand.vmem [shape: f32[2,16,32], index: 1, kind: input, shape index: {}]   ;;  %s3520_s2 = inlined_call_operand.vmem [shape: bf16[2,32,64], index: 2, kind: input, shape index: {}]   ;;  %s3521_s3 = inlined_call_operand.vmem [shape: bf16[2,32,32], index: 3, kind: input, shape index: {}]   ;;  %s3522_s4 = inlined_call_operand.vmem [shape: bf16[2,32,32], index: 4, kind: input, shape index: {}]   ;;  %s3523_s5 = inlined_call_operand.vmem [shape: bf16[2,32,64], index: 5, kind: input, shape index: {}]   ;;  %s3524_s6 = inlined_call_operand.vmem [shape: bf16[2,64,32], index: 6, kind: input, shape index: {}]   ;;  %s3525_s7 = inlined_call_operand.vmem [shape: f32[2,9,32], index: 7, kind: input, shape index: {}]   ;;  %s3526_s8 = inlined_call_operand.vmem [shape: f32[2,1,64], index: 8, kind: input, shape index: {}]   ;;  %s3527_s9 = inlined_call_operand.vmem [shape: f32[2,32], index: 9, kind: input, shape index: {}]   ;;  %s3528_s10 = inlined_call_operand.hbm [shape: f32[2,16,32], index: 10, kind: output, shape index: {}, may-alias: {0,10}]  }
   0x1   :  { %3530 = sst [smem:[#allocation9_spill]] %s3518_s0 }
   0x2   :  { %3531 = sst [smem:[#allocation10_spill]] %s3520_s2 }
   0x3   :  { %3532 = sst [smem:[#allocation11_spill]] %s3521_s3 }
   0x4   :  { %15 = vsyncpa [#allocation4], 0 }
   0x5   :  { %16 = vsyncpa [#allocation5], 0  ;;  %s3008_s13 = smov 0   ;;  %s3010_s14 = smov 0  }
   0x6   :  { %s3012_s15 = smov 0  }
   0x7 LB: > { %s3529_s16 = sadd.s32 4294967295, %s2933_s15   ;;  %s31_s17 = sadd.s32 1, %s2929_s14  ;;  %s2933_s15 = sphi %s3012_s15, %s22_s15   ;;  %s2929_s14 = sphi %s3010_s14, %s3541_s14   ;;  %s2925_s13 = sphi %s3008_s13, %s3540_s13  }
   0x8   : > { %p32_p0 = scmp.ge.s32.totalorder %s31_s17, 2  ;;  %p2423_p1 = scmp.ge.s32.totalorder %s2933_s15, 1 }
   0x9   : > { %p320_p2 = scmp.lt.s32.totalorder %s2933_s15, 3  ;;  %p3035_p4 = scmp.eq.s32.totalorder %s3529_s16, 0 }
   0xa   : > { %s3543_s17 = smov (%p32_p0, %s31_s17), 0  ;;  %s2935_s20 = smov [#allocation3]  }
   0xb   : > { %p3029_p3 = pnand %p2423_p1, %p320_p2  ;;  %s336_s21 = sshll.u32 %s2935_s20, 4  ;;  %s337_s21 = int_to_ptr.vmem [resolvable:$true] %s336_s21 }
   0xc   : > { %s2864_s22 = scalar_lea.vmem %s337_s21, 512  ;;  %p2872_p11 = scmp.lt.s32.totalorder %s337_s21, %s337_s21 }
   0xd   : > { %p2698_p5 = pneg %p3029_p3  ;;  %p2865_p8 = scmp.ne.s32.totalorder %s337_s21, %s2864_s22 }
   0xe   : > { %p2873_p12 = scmp.lt.s32.totalorder %s2864_s22, %s2864_s22 }
   0xf   : > { %p2699_p6 = pnand %p3035_p4, %p2698_p5 }
  0x10   : > { %p2874_p13 = por %p2873_p12, %p2872_p11 }
  0x11   : > { %p2855_p7 = pneg %p2699_p6 }
  0x13   : > { %p2867_p9 = pnand %p2865_p8, %p2855_p7 }
  0x15   : > { %p2868_p10 = pneg %p2867_p9 }
  0x17   : > { %p2875_p0 = pnand %p2874_p13, %p2868_p10 }
  0x19   : > { %2878 = shalt.err (!%p2875_p0)
}
  0x1a   : > { %s2936_s23 = smov 128   ;;  %s2937_s24 = smov 8  }
  0x1b   : > { %s3535_s0 = sld [smem:[#allocation9_spill]] }
  0x1d   : > { %419 = sbr.rel (%p3029_p3) target bundleno = 2890 (0xb4a), region = 60 }
  0x21   : > { %2701 = dma.hbm_to_vmem [thread:$0]  (!%p2699_p6), %s3535_s0, 512, %s337_s21, [#allocation4], %s2936_s23, %s2936_s23, %s2937_s24  }
  0x22   : > { %2916 = dma.done.wait (%p3035_p4), [#allocation4], 512  }
  0x23   : > { %2918 = vsyncadd (%p3035_p4), [#allocation4], 4294966784  ;;  %p494_p1 = scmp.lt.s32.totalorder %s2925_s13, 1  ;;  %s3536_s2 = sld [smem:[#allocation10_spill]] }
  0x24   : > { %s3537_s3 = sld [smem:[#allocation11_spill]]  ;;  %p2441_p2 = scmp.ne.s32.totalorder %s2925_s13, 0 }
  0x25   : > { %s3054_s27 = scalar_select %p494_p1, %s2925_s13, 1 }
  0x27   : > { %s2490_s28 = sshll.u32 %s3054_s27, 4  ;;  %s2494_s29 = sshll.u32 %s3054_s27, 5 }
  0x28   : > { %s3069_s23 = scalar_lea.vmem %s3522_s4, %s2490_s28  ;;  %s3074_s26 = scalar_lea.vmem %s3523_s5, %s2490_s28 }
  0x29   : > { %s498_s12 = scalar_lea.vmem %s3536_s2, %s2490_s28  ;;  %s3079_s30 = scalar_lea.vmem %s3524_s6, %s2494_s29 }
  0x2a   : > { %s3064_s21 = scalar_lea.vmem %s3537_s3, %s2490_s28  ;;  %s3084_s18 = scalar_lea.vmem %s3525_s7, %s2490_s28 }
  0x2b   : > { %s526_s19 = scalar_lea.vmem %s3526_s8, %s3054_s27  ;;  %532 = sbr.rel (%p2441_p2) target bundleno = 51 (0x33), region = 68 }
  0x30   : > { %v533_v0 = vld [vmem:[#allocation3] sm:$0xff]  ;;  %vm537_vm0 = vcmask 261120   ;;  %v534_v1 = vld [vmem:[#allocation3 + $0x8] sm:$0xff]  ;;  %v535_v2 = vld [vmem:[#allocation3 + $0x10] sm:$0xff] }
  0x31   : > { %538 = vst.msk [vmem:[#allocation6] sm:$0xff] %vm537_vm0, %v533_v0  ;;  %539 = vst.msk [vmem:[#allocation6 + $0x8] sm:$0xff] %vm537_vm0, %v534_v1  ;;  %v536_v3 = vld [vmem:[#allocation3 + $0x18] sm:$0xff] }
  0x32   : > { %540 = vst.msk [vmem:[#allocation6 + $0x10] sm:$0xff] %vm537_vm0, %v535_v2  ;;  %541 = vst.msk [vmem:[#allocation6 + $0x18] sm:$0xff] %vm537_vm0, %v536_v3 }
  0x33 PF: > { %v2748_v4 = vld [vmem:[%s498_s12 + $0x8] sm:$0xff]   ;;  %v631_v5 = vlaneseq  ;;  %v2749_v6 = vld [vmem:[%s498_s12] sm:$0xff]   ;;  %vm575_vm1 = vcmask 261120   ;;  %v551_v16 = vld [vmem:[%s3519_s1 + $0x10] sm:$0xff]  ;;  %s2938_s24 = smov 32   ;;  %v2939_v25 = vmov 0.0  }
  0x34   : > { %2550 = vmatprep.subr.bf16.mxu1 %v2748_v4  ;;  %v549_v9 = vld [vmem:[%s3519_s1] sm:$0xff]  ;;  %v550_v11 = vld [vmem:[%s3519_s1 + $0x8] sm:$0xff]  ;;  %v552_v17 = vld [vmem:[%s3519_s1 + $0x18] sm:$0xff]  ;;  %2566 = vmatprep.subr.bf16.mxu0 %v2939_v25  ;;  %vm2940_vm2 = vmmov 0   ;;  %s2941_s25 = smov 88   ;;  %s2942_s11 = smov 96  }
  0x35   : > { %v3098_v10 = vshrl.u32 %v631_v5, 7  ;;  %2551 = vmatpush3.bf16.msra.mxu1 %v2748_v4  ;;  %v3116_v18 = vld [vmem:[%s3084_s18] sm:$0xff]  ;;  %2568 = vmatprep.mubr.msk.bf16.mxu0 %vm2940_vm2, %v2939_v25  ;;  %s2943_s20 = smov 80   ;;  %s2944_s0 = smov 120   ;;  %v2750_v49 = vld [vmem:[%s3064_s21 + $0x8] sm:$0xff]   ;;  %vm741_vm3 = vcmask 64512  }
  0x36   : > { %2552 = vmatprep.subr.bf16.mxu1 %v2749_v6  ;;  %s2945_s2 = smov 72   ;;  %s2946_s3 = smov 112   ;;  %v2751_v50 = vld [vmem:[%s3064_s21] sm:$0xff]   ;;  %vm789_vm4 = vcmask 130048   ;;  %vm990_vm5 = vcmask 130112   ;;  %vm1122_vm6 = vcmask 195712  }
  0x37   : > { %v645_v19 = vsub.s32 1, %v3098_v10  ;;  %v633_v27 = vsub.s32 0, %v3098_v10  ;;  %s2947_s16 = smov 104   ;;  %s2948_s21 = smov 8   ;;  %vm1254_vm7 = vcmask 261312   ;;  %vm2047_vm8 = vcmask 523264  }
  0x38   : > { %v3091_v7 = vld [vmem:[#allocation6] sm:$0xff]  ;;  %v3093_v8 = vld [vmem:[#allocation6 + $0x8] sm:$0xff]  ;;  %s2949_s28 = smov 16   ;;  %s2950_s29 = smov 24  }
  0x39   : > { %v553_v12 = vadd.f32 %v549_v9, %v3091_v7  ;;  %v3104_v13 = vld [vmem:[#allocation6 + $0x10] sm:$0xff]  ;;  %v3106_v14 = vld [vmem:[#allocation6 + $0x18] sm:$0xff]  ;;  %v554_v15 = vadd.f32 %v550_v11, %v3093_v8  ;;  %v646_v23 = vrot.slane %v3116_v18, %v645_v19  ;;  %2553 = vmatpush3.bf16.msra.mxu1 %v2749_v6  ;;  %v634_v30 = vrot.slane %v3116_v18, %v633_v27  ;;  %p2482_p3 = scmp.eq.s32.totalorder %s2925_s13, 1 }
  0x3a   : > { %v555_v20 = vadd.f32 %v551_v16, %v3104_v13  ;;  %v556_v21 = vadd.f32 %v552_v17, %v3106_v14  ;;  %v655_v51 = vpack.c.bf16 %v3093_v8, %v3091_v7  ;;  %2558 = vmatprep.subr.bf16.mxu1 %v2750_v49  ;;  %v656_v52 = vpack.c.bf16 %v3106_v14, %v3104_v13 }
  0x3b   : > { %v557_v22 = vpack.c.bf16 %v554_v15, %v553_v12  ;;  %648 = vrot.lane.b32.xlu0 %v646_v23, %s2938_s24  ;;  %v663_v12 = vsub.s32 2, %v3098_v10 }
  0x3c   : > { %v558_v24 = vpack.c.bf16 %v556_v21, %v555_v20 }
  0x3d   : > { %2554 = vmatprep.mubr.msk.bf16.mxu1 %vm575_vm1, %v557_v22  ;;  %v664_v13 = vrot.slane %v3116_v18, %v663_v12 }
  0x3e   : > { %2555 = vmatmul.mubr.msk.bf16.vlgmr.msra.gmra.mxu1 %vm575_vm1, %v558_v24 }
  0x3f   : > { %2562 = vmatprep.mubr.msk.bf16.mxu1 %vm575_vm1, %v655_v51  ;;  %2559 = vmatpush3.bf16.msra.mxu1 %v2750_v49 }
  0x40   : > { %2560 = vmatprep.subr.bf16.mxu1 %v2751_v50 }
  0x43   : > { %2561 = vmatpush3.bf16.msra.mxu1 %v2751_v50 }
  0x44   : > { %2572 = vmatprep.subr.bf16.mxu1 %v2939_v25 }
  0x46   : > { %2563 = vmatmul.mubr.msk.bf16.vlgmr.msra.gmra.mxu1 %vm575_vm1, %v656_v52 }
  0x47   : > { %2574 = vmatprep.mubr.msk.bf16.mxu1 %vm2940_vm2, %v2939_v25 }
  0xad   : > { %v649_v31 = vpop.permute.xlu0 %648 }
  0xfe   : > { %v2556_v26 = vpop.f32.mrf.mxu1 }
  0xff   : > { %v637_v43 = vadd.f32 %v2556_v26, %v634_v30  ;;  %v653_v44 = vadd.f32 %v2556_v26, %v649_v31 }
 0x100   : > { %v616_v28 = vpop.f32.mrf.mxu1 }
 0x101   : > { %v635_v33 = vadd.f32 %v634_v30, %v616_v28  ;;  %v651_v34 = vadd.f32 %v649_v31, %v616_v28  ;;  %v641_v47 = vmul.f32 0.35355338, %v637_v43 }
 0x102   : > { %v2557_v29 = vpop.f32.mrf.mxu1 }
 0x103   : > { %v639_v39 = vmul.f32 0.35355338, %v635_v33  ;;  %v638_v41 = vadd.f32 %v2557_v29, %v634_v30  ;;  %v654_v42 = vadd.f32 %v2557_v29, %v649_v31 }
 0x104   : > { %v619_v32 = vpop.f32.mrf.mxu1 }
 0x105   : > { %v636_v35 = vadd.f32 %v634_v30, %v619_v32  ;;  %v652_v36 = vadd.f32 %v649_v31, %v619_v32  ;;  %v642_v45 = vmul.f32 0.35355338, %v638_v41  ;;  %v735_v46 = vpack.c.bf16 %v654_v42, %v653_v44 }
 0x106   : > { %v2564_v14 = vpop.f32.mrf.mxu1 }
 0x107   : > { %v640_v37 = vmul.f32 0.35355338, %v636_v35  ;;  %v734_v38 = vpack.c.bf16 %v652_v36, %v651_v34  ;;  %v733_v48 = vpack.c.bf16 %v642_v45, %v641_v47  ;;  %v726_v15 = vadd.f32 %v2564_v14, %v664_v13 }
 0x108   : > { %v717_v16 = vpop.f32.mrf.mxu1 }
 0x109   : > { %862 = vrot.lane.b32.xlu1 %v734_v38, %s2941_s25  ;;  %739 = vrot.lane.b32.xlu0 %v734_v38, %s2942_s11  ;;  %v732_v40 = vpack.c.bf16 %v640_v37, %v639_v39  ;;  %v718_v19 = vadd.f32 %v717_v16, %v664_v13 }
 0x10a   : > { %v2565_v17 = vpop.f32.mrf.mxu1 }
 0x10b   : > { %v729_v20 = vadd.f32 %v2565_v17, %v664_v13 }
 0x10c   : > { %v720_v21 = vpop.f32.mrf.mxu1 }
 0x10d   : > { %995 = vrot.lane.b32.xlu0 %v734_v38, %s2943_s20  ;;  %860 = vrot.lane.b32.xlu1 %v732_v40, %s2944_s0  ;;  %v3185_v22 = vpack.c.bf16 %v729_v20, %v726_v15  ;;  %v721_v23 = vadd.f32 %v720_v21, %v664_v13 }
 0x10f   : > { %v3187_v24 = vpack.c.bf16 %v721_v23, %v718_v19 }
 0x111   : > { %1127 = vrot.lane.b32.xlu0 %v734_v38, %s2945_s2  ;;  %993 = vrot.lane.b32.xlu1 %v732_v40, %s2946_s3 }
 0x112   : > { %2573 = vmatpush3.bf16.msra.mxu1 %v3187_v24 }
 0x113   : > { %2584 = vmatprep.subr.bf16.mxu1 %v2939_v25 }
 0x115   : > { %1258 = vrot.lane.b32.xlu0 %v735_v46, %s2942_s11  ;;  %1125 = vrot.lane.b32.xlu1 %v732_v40, %s2947_s16 }
 0x119   : > { %1378 = vrot.lane.b32.xlu0 %v733_v48, %s2944_s0  ;;  %1380 = vrot.lane.b32.xlu1 %v735_v46, %s2941_s25 }
 0x11d   : > { %1510 = vrot.lane.b32.xlu0 %v733_v48, %s2946_s3  ;;  %1512 = vrot.lane.b32.xlu1 %v735_v46, %s2943_s20 }
 0x121   : > { %1641 = vrot.lane.b32.xlu0 %v733_v48, %s2947_s16  ;;  %1643 = vrot.lane.b32.xlu1 %v735_v46, %s2945_s2 }
 0x17b   : > { %v740_v53 = vpop.permute.xlu0 %739  ;;  %v863_v55 = vpop.permute.xlu1 %862 }
 0x17c   : > { %v746_v54 = vsel %vm741_vm3, %v740_v53, 0  ;;  %v868_v56 = vsel %vm741_vm3, %v863_v55, 0 }
 0x17d   : > { %2567 = vmatpush3.bf16.xpose.msra.mxu0 %v746_v54 }
 0x17e   : > { %2578 = vmatprep.subr.bf16.mxu0 %v2939_v25 }
 0x17f   : > { %v996_v57 = vpop.permute.xlu0 %995  ;;  %v861_v58 = vpop.permute.xlu1 %860 }
 0x180   : > { %v1001_v59 = vsel %vm741_vm3, %v996_v57, 0 }
 0x183   : > { %v1128_v60 = vpop.permute.xlu0 %1127  ;;  %v994_v61 = vpop.permute.xlu1 %993 }
 0x184   : > { %2569 = vmatmul.mubr.msk.bf16.vlgmr.msra.gmra.mxu0 %vm741_vm3, %v732_v40  ;;  %v1133_v62 = vsel %vm741_vm3, %v1128_v60, 0 }
 0x185   : > { %2579 = vmatpush3.bf16.xpose.msra.mxu0 %v868_v56  ;;  %2580 = vmatprep.mubr.msk.bf16.mxu0 %vm2940_vm2, %v2939_v25 }
 0x186   : > { %2590 = vmatprep.subr.bf16.mxu0 %v2939_v25 }
 0x187   : > { %v1259_v63 = vpop.permute.xlu0 %1258  ;;  %v1126_v0 = vpop.permute.xlu1 %1125 }
 0x188   : > { %v1264_v1 = vsel %vm741_vm3, %v1259_v63, 0 }
 0x18b   : > { %v1381_v2 = vpop.permute.xlu1 %1380  ;;  %v1379_v5 = vpop.permute.xlu0 %1378 }
 0x18c   : > { %2581 = vmatmul.mubr.msk.bf16.vlgmr.msra.gmra.mxu0 %vm741_vm3, %v861_v58  ;;  %v1386_v3 = vsel %vm741_vm3, %v1381_v2, 0 }
 0x18d   : > { %2591 = vmatpush3.bf16.xpose.msra.mxu0 %v1001_v59  ;;  %2592 = vmatprep.mubr.msk.bf16.mxu0 %vm2940_vm2, %v2939_v25 }
 0x18e   : > { %2602 = vmatprep.subr.bf16.mxu0 %v2939_v25 }
 0x18f   : > { %v1513_v4 = vpop.permute.xlu1 %1512  ;;  %v1511_v8 = vpop.permute.xlu0 %1510 }
 0x190   : > { %v1518_v6 = vsel %vm741_vm3, %v1513_v4, 0 }
 0x193   : > { %v1644_v7 = vpop.permute.xlu1 %1643  ;;  %v1642_v11 = vpop.permute.xlu0 %1641 }
 0x194   : > { %2593 = vmatmul.mubr.msk.bf16.vlgmr.msra.gmra.mxu0 %vm741_vm3, %v994_v61  ;;  %v1649_v9 = vsel %vm741_vm3, %v1644_v7, 0 }
 0x195   : > { %2603 = vmatpush3.bf16.xpose.msra.mxu0 %v1133_v62  ;;  %2604 = vmatprep.mubr.msk.bf16.mxu0 %vm2940_vm2, %v2939_v25 }
 0x196   : > { %2614 = vmatprep.subr.bf16.mxu0 %v2939_v25 }
 0x19c   : > { %2605 = vmatmul.mubr.msk.bf16.vlgmr.msra.gmra.mxu0 %vm741_vm3, %v1126_v0 }
 0x19d   : > { %2615 = vmatpush3.bf16.xpose.msra.mxu0 %v1264_v1  ;;  %2616 = vmatprep.mubr.msk.bf16.mxu0 %vm2940_vm2, %v2939_v25 }
 0x19e   : > { %2626 = vmatprep.subr.bf16.mxu0 %v2939_v25 }
 0x1a4   : > { %2617 = vmatmul.mubr.msk.bf16.vlgmr.msra.gmra.mxu0 %vm741_vm3, %v733_v48 }
 0x1a5   : > { %2627 = vmatpush3.bf16.xpose.msra.mxu0 %v1386_v3  ;;  %2628 = vmatprep.mubr.msk.bf16.mxu0 %vm2940_vm2, %v2939_v25 }
 0x1a6   : > { %2638 = vmatprep.subr.bf16.mxu0 %v2939_v25 }
 0x1ac   : > { %2629 = vmatmul.mubr.msk.bf16.vlgmr.msra.gmra.mxu0 %vm741_vm3, %v1379_v5 }
 0x1ad   : > { %2639 = vmatpush3.bf16.xpose.msra.mxu0 %v1518_v6  ;;  %2640 = vmatprep.mubr.msk.bf16.mxu0 %vm2940_vm2, %v2939_v25 }
 0x1ae   : > { %2650 = vmatprep.subr.bf16.mxu0 %v2939_v25 }
 0x1b4   : > { %2641 = vmatmul.mubr.msk.bf16.vlgmr.msra.gmra.mxu0 %vm741_vm3, %v1511_v8 }
 0x1b5   : > { %2651 = vmatpush3.bf16.xpose.msra.mxu0 %v1649_v9  ;;  %2652 = vmatprep.mubr.msk.bf16.mxu0 %vm2940_vm2, %v2939_v25 }
 0x1bc   : > { %2653 = vmatmul.mubr.msk.bf16.vlgmr.msra.gmra.mxu0 %vm741_vm3, %v1642_v11 }
 0x244   : > { %v3191_v26 = vpop.f32.mrf.mxu0 }
 0x245   : > { %v790_v18 = vsel %vm789_vm4, %v3191_v26, -inf }
 0x246   : > { %791 = vmax.xlane.f32.xlu1 %v790_v18  ;;  %v2570_v27 = vpop.f32.mrf.mxu0 }
 0x248   : > { %v3195_v28 = vpop.f32.mrf.mxu0 }
 0x249   : > { %v793_v29 = vsel %vm789_vm4, %v3195_v28, -inf }
 0x24a   : > { %794 = vmax.xlane.f32.xlu0 %v793_v29  ;;  %v2571_v30 = vpop.f32.mrf.mxu0 }
 0x24c   : > { %v3199_v31 = vpop.f32.mrf.mxu0 }
 0x24d   : > { %v911_v32 = vsel %vm789_vm4, %v3199_v31, -inf }
 0x24e   : > { %912 = vmax.xlane.f32.xlu0 %v911_v32  ;;  %v2582_v33 = vpop.f32.mrf.mxu0 }
 0x250   : > { %v3203_v34 = vpop.f32.mrf.mxu0 }
 0x251   : > { %v914_v35 = vsel %vm789_vm4, %v3203_v34, -inf }
 0x252   : > { %915 = vmax.xlane.f32.xlu1 %v914_v35  ;;  %v2583_v36 = vpop.f32.mrf.mxu0 }
 0x254   : > { %v3207_v37 = vpop.f32.mrf.mxu0 }
 0x255   : > { %v1044_v38 = vsel %vm789_vm4, %v3207_v37, -inf }
 0x256   : > { %1045 = vmax.xlane.f32.xlu0 %v1044_v38  ;;  %v2594_v39 = vpop.f32.mrf.mxu0 }
 0x258   : > { %v3211_v40 = vpop.f32.mrf.mxu0 }
 0x259   : > { %v1047_v41 = vsel %vm789_vm4, %v3211_v40, -inf }
 0x25a   : > { %1048 = vmax.xlane.f32.xlu1 %v1047_v41  ;;  %v2595_v42 = vpop.f32.mrf.mxu0 }
 0x25c   : > { %v3215_v43 = vpop.f32.mrf.mxu0 }
 0x25d   : > { %v1176_v44 = vsel %vm789_vm4, %v3215_v43, -inf }
 0x25e   : > { %1177 = vmax.xlane.f32.xlu0 %v1176_v44  ;;  %v2606_v45 = vpop.f32.mrf.mxu0 }
 0x260   : > { %v3219_v46 = vpop.f32.mrf.mxu0 }
 0x261   : > { %v1179_v47 = vsel %vm789_vm4, %v3219_v46, -inf }
 0x262   : > { %1180 = vmax.xlane.f32.xlu1 %v1179_v47  ;;  %v2607_v48 = vpop.f32.mrf.mxu0 }
 0x264   : > { %v3223_v49 = vpop.f32.mrf.mxu0 }
 0x265   : > { %v1307_v50 = vsel %vm789_vm4, %v3223_v49, -inf }
 0x266   : > { %1308 = vmax.xlane.f32.xlu0 %v1307_v50  ;;  %v2618_v51 = vpop.f32.mrf.mxu0 }
 0x268   : > { %v3227_v52 = vpop.f32.mrf.mxu0 }
 0x269   : > { %v1310_v53 = vsel %vm789_vm4, %v3227_v52, -inf }
 0x26a   : > { %1311 = vmax.xlane.f32.xlu1 %v1310_v53  ;;  %v2619_v54 = vpop.f32.mrf.mxu0 }
 0x26c   : > { %v3231_v55 = vpop.f32.mrf.mxu0 }
 0x26d   : > { %v1429_v56 = vsel %vm789_vm4, %v3231_v55, -inf }
 0x26e   : > { %1430 = vmax.xlane.f32.xlu0 %v1429_v56  ;;  %v2630_v57 = vpop.f32.mrf.mxu0 }
 0x270   : > { %v3235_v58 = vpop.f32.mrf.mxu0 }
 0x271   : > { %v1432_v59 = vsel %vm789_vm4, %v3235_v58, -inf }
 0x272   : > { %1433 = vmax.xlane.f32.xlu1 %v1432_v59  ;;  %v2631_v60 = vpop.f32.mrf.mxu0 }
 0x274   : > { %v3239_v61 = vpop.f32.mrf.mxu0 }
 0x275   : > { %v1561_v62 = vsel %vm789_vm4, %v3239_v61, -inf }
 0x276   : > { %1562 = vmax.xlane.f32.xlu0 %v1561_v62  ;;  %v2642_v63 = vpop.f32.mrf.mxu0 }
 0x278   : > { %v3243_v0 = vpop.f32.mrf.mxu0 }
 0x279   : > { %v1564_v1 = vsel %vm789_vm4, %v3243_v0, -inf }
 0x27a   : > { %1565 = vmax.xlane.f32.xlu1 %v1564_v1  ;;  %v2643_v2 = vpop.f32.mrf.mxu0 }
 0x27c   : > { %v3247_v3 = vpop.f32.mrf.mxu0 }
 0x27d   : > { %v1692_v4 = vsel %vm789_vm4, %v3247_v3, -inf }
 0x27e   : > { %1693 = vmax.xlane.f32.xlu0 %v1692_v4  ;;  %v2654_v5 = vpop.f32.mrf.mxu0 }
 0x280   : > { %v3251_v6 = vpop.f32.mrf.mxu0 }
 0x281   : > { %v1695_v7 = vsel %vm789_vm4, %v3251_v6, -inf }
 0x282   : > { %1696 = vmax.xlane.f32.xlu1 %v1695_v7  ;;  %v2655_v8 = vpop.f32.mrf.mxu0 }
 0x293   : > { %1067 = vrot.lane.b32.xlu1 %v3187_v24, %s2946_s3 }
 0x294   : > { %935 = vrot.lane.b32.xlu0 %v3187_v24, %s2944_s0 }
 0x2cf   : > { %v792_v9 = vpop.xlane.xlu1 %791 }
 0x2d0   : > { %v796_v11 = vsub.f32 %v3191_v26, %v792_v9 }
 0x2d2   : > { %v798_v12 = vmul.f32 1.442695, %v796_v11 }
 0x2d3   : > { %v795_v13 = vpop.xlane.xlu0 %794 }
 0x2d4   : > { %2760 = vpow2.f32 %v798_v12  ;;  %v797_v14 = vsub.f32 %v3195_v28, %v795_v13 }
 0x2d6   : > { %v800_v15 = vmul.f32 1.442695, %v797_v14 }
 0x2d7   : > { %v913_v16 = vpop.xlane.xlu0 %912 }
 0x2d8   : > { %2762 = vpow2.f32 %v800_v15  ;;  %v917_v17 = vsub.f32 %v3199_v31, %v913_v16 }
 0x2da   : > { %v919_v19 = vmul.f32 1.442695, %v917_v17 }
 0x2db   : > { %v916_v20 = vpop.xlane.xlu1 %915 }
 0x2dc   : > { %2764 = vpow2.f32 %v919_v19  ;;  %v918_v21 = vsub.f32 %v3203_v34, %v916_v20 }
 0x2de   : > { %v921_v23 = vmul.f32 1.442695, %v918_v21 }
 0x2df   : > { %v1046_v18 = vpop.xlane.xlu0 %1045 }
 0x2e0   : > { %2766 = vpow2.f32 %v921_v23  ;;  %v1050_v26 = vsub.f32 %v3207_v37, %v1046_v18 }
 0x2e1   : > { %v3264_v27 = vpop.eup %2760 }
 0x2e2   : > { %v1052_v29 = vmul.f32 1.442695, %v1050_v26  ;;  %v802_v28 = vsel %vm789_vm4, %v3264_v27, 0.0 }
 0x2e3   : > { %v1049_v30 = vpop.xlane.xlu1 %1048  ;;  %803 = vadd.xlane.f32.xlu0 %v802_v28 }
 0x2e4   : > { %2768 = vpow2.f32 %v1052_v29  ;;  %v1051_v31 = vsub.f32 %v3211_v40, %v1049_v30 }
 0x2e5   : > { %v3269_v32 = vpop.eup %2762 }
 0x2e6   : > { %v1054_v33 = vmul.f32 1.442695, %v1051_v31  ;;  %v805_v34 = vsel %vm789_vm4, %v3269_v32, 0.0 }
 0x2e7   : > { %v1178_v35 = vpop.xlane.xlu0 %1177  ;;  %806 = vadd.xlane.f32.xlu1 %v805_v34 }
 0x2e8   : > { %2770 = vpow2.f32 %v1054_v33  ;;  %v1182_v36 = vsub.f32 %v3215_v43, %v1178_v35 }
 0x2e9   : > { %v3274_v37 = vpop.eup %2764 }
 0x2ea   : > { %v1184_v38 = vmul.f32 1.442695, %v1182_v36  ;;  %v923_v39 = vsel %vm789_vm4, %v3274_v37, 0.0 }
 0x2eb   : > { %v1181_v41 = vpop.xlane.xlu1 %1180  ;;  %924 = vadd.xlane.f32.xlu0 %v923_v39 }
 0x2ec   : > { %2772 = vpow2.f32 %v1184_v38  ;;  %v1183_v40 = vsub.f32 %v3219_v46, %v1181_v41 }
 0x2ed   : > { %v3279_v42 = vpop.eup %2766 }
 0x2ee   : > { %v1186_v44 = vmul.f32 1.442695, %v1183_v40  ;;  %v926_v45 = vsel %vm789_vm4, %v3279_v42, 0.0 }
 0x2ef   : > { %v1309_v47 = vpop.xlane.xlu0 %1308  ;;  %927 = vadd.xlane.f32.xlu1 %v926_v45 }
 0x2f0   : > { %2774 = vpow2.f32 %v1186_v44  ;;  %v1313_v43 = vsub.f32 %v3223_v49, %v1309_v47 }
 0x2f1   : > { %v3284_v48 = vpop.eup %2768 }
 0x2f2   : > { %v1315_v50 = vmul.f32 1.442695, %v1313_v43  ;;  %v1056_v51 = vsel %vm789_vm4, %v3284_v48, 0.0 }
 0x2f3   : > { %v1312_v53 = vpop.xlane.xlu1 %1311  ;;  %1057 = vadd.xlane.f32.xlu0 %v1056_v51 }
 0x2f4   : > { %2776 = vpow2.f32 %v1315_v50  ;;  %v1314_v46 = vsub.f32 %v3227_v52, %v1312_v53 }
 0x2f5   : > { %v3289_v54 = vpop.eup %2770 }
 0x2f6   : > { %v1317_v56 = vmul.f32 1.442695, %v1314_v46  ;;  %v1059_v57 = vsel %vm789_vm4, %v3289_v54, 0.0 }
 0x2f7   : > { %v1431_v59 = vpop.xlane.xlu0 %1430  ;;  %1060 = vadd.xlane.f32.xlu1 %v1059_v57 }
 0x2f8   : > { %2778 = vpow2.f32 %v1317_v56  ;;  %v1435_v49 = vsub.f32 %v3231_v55, %v1431_v59 }
 0x2f9   : > { %v3294_v60 = vpop.eup %2772 }
 0x2fa   : > { %v1437_v62 = vmul.f32 1.442695, %v1435_v49  ;;  %v1188_v63 = vsel %vm789_vm4, %v3294_v60, 0.0 }
 0x2fb   : > { %v1434_v1 = vpop.xlane.xlu1 %1433  ;;  %1189 = vadd.xlane.f32.xlu0 %v1188_v63 }
 0x2fc   : > { %2780 = vpow2.f32 %v1437_v62  ;;  %v1436_v52 = vsub.f32 %v3235_v58, %v1434_v1 }
 0x2fd   : > { %v3299_v2 = vpop.eup %2774 }
 0x2fe   : > { %v1439_v4 = vmul.f32 1.442695, %v1436_v52  ;;  %v1191_v5 = vsel %vm789_vm4, %v3299_v2, 0.0 }
 0x2ff   : > { %1192 = vadd.xlane.f32.xlu1 %v1191_v5  ;;  %v1563_v8 = vpop.xlane.xlu0 %1562 }
 0x300   : > { %2782 = vpow2.f32 %v1439_v4  ;;  %v1567_v31 = vsub.f32 %v3239_v61, %v1563_v8 }
 0x301   : > { %v3303_v55 = vpop.eup %2776 }
 0x302   : > { %v1319_v7 = vsel %vm789_vm4, %v3303_v55, 0.0  ;;  %v1569_v33 = vmul.f32 1.442695, %v1567_v31 }
 0x303   : > { %v1566_v9 = vpop.xlane.xlu1 %1565  ;;  %1320 = vadd.xlane.f32.xlu0 %v1319_v7 }
 0x304   : > { %v1568_v11 = vsub.f32 %v3243_v0, %v1566_v9 }
 0x305   : > { %v3308_v12 = vpop.eup %2778 }
 0x306   : > { %v1571_v58 = vmul.f32 1.442695, %v1568_v11  ;;  %v1322_v13 = vsel %vm789_vm4, %v3308_v12, 0.0 }
 0x307   : > { %v1694_v14 = vpop.xlane.xlu0 %1693  ;;  %1323 = vadd.xlane.f32.xlu1 %v1322_v13 }
 0x308   : > { %2784 = vpow2.f32 %v1571_v58  ;;  %v1698_v15 = vsub.f32 %v3247_v3, %v1694_v14 }
 0x309   : > { %v3313_v16 = vpop.eup %2780 }
 0x30a   : > { %v1700_v17 = vmul.f32 1.442695, %v1698_v15  ;;  %v1441_v19 = vsel %vm789_vm4, %v3313_v16, 0.0 }
 0x30b   : > { %1442 = vadd.xlane.f32.xlu1 %v1441_v19  ;;  %v1697_v20 = vpop.xlane.xlu1 %1696  ;;  %v936_v35 = vpop.permute.xlu0 %935 }
 0x30c   : > { %2786 = vpow2.f32 %v1700_v17  ;;  %v1699_v0 = vsub.f32 %v3251_v6, %v1697_v20 }
 0x30d   : > { %v3318_v21 = vpop.eup %2782 }
 0x30e   : > { %v1702_v23 = vmul.f32 1.442695, %v1699_v0  ;;  %v1444_v18 = vsel %vm789_vm4, %v3318_v21, 0.0 }
 0x30f   : > { %1445 = vadd.xlane.f32.xlu1 %v1444_v18  ;;  %v1068_v61 = vpop.permute.xlu1 %1067 }
 0x310   : > { %2788 = vpow2.f32 %v1702_v23 }
 0x311   : > { %2790 = vpow2.f32 %v1569_v33 }
 0x315   : > { %v3322_v3 = vpop.eup %2784 }
 0x316   : > { %v1576_v26 = vsel %vm789_vm4, %v3322_v3, 0.0 }
 0x317   : > { %1577 = vadd.xlane.f32.xlu1 %v1576_v26 }
 0x319   : > { %v3326_v29 = vpop.eup %2786  ;;  %1199 = vrot.lane.b32.xlu0 %v3187_v24, %s2947_s16 }
 0x31a   : > { %v1704_v6 = vsel %vm789_vm4, %v3326_v29, 0.0 }
 0x31b   : > { %1705 = vadd.xlane.f32.xlu1 %v1704_v6 }
 0x31d   : > { %v3332_v28 = vpop.eup %2788 }
 0x31e   : > { %v1707_v30 = vsel %vm789_vm4, %v3332_v28, 0.0  ;;  %v3339_v34 = vpop.eup %2790 }
 0x31f   : > { %1708 = vadd.xlane.f32.xlu1 %v1707_v30  ;;  %v1573_v24 = vsel %vm789_vm4, %v3339_v34, 0.0 }
 0x330   : > { %1453 = vrot.lane.b32.xlu1 %v3185_v22, %s2944_s0 }
 0x338   : > { %1574 = vadd.xlane.f32.xlu0 %v1573_v24 }
 0x34e   : > { %1584 = vrot.lane.b32.xlu0 %v3185_v22, %s2946_s3 }
 0x352   : > { %1715 = vrot.lane.b32.xlu0 %v3185_v22, %s2947_s16 }
 0x36c   : > { %v804_v36 = vpop.xlane.xlu0 %803 }
 0x36d   : > { %2792 = vrcp.f32 %v804_v36 }
 0x370   : > { %v807_v38 = vpop.xlane.xlu1 %806 }
 0x371   : > { %2794 = vrcp.f32 %v807_v38 }
 0x374   : > { %v925_v39 = vpop.xlane.xlu0 %924 }
 0x375   : > { %2796 = vrcp.f32 %v925_v39 }
 0x378   : > { %v928_v41 = vpop.xlane.xlu1 %927 }
 0x379   : > { %2798 = vrcp.f32 %v928_v41 }
 0x37a   : > { %v2793_v40 = vpop.eup %2792 }
 0x37b   : > { %v810_v47 = vmul.f32 %v2793_v40, %v3264_v27 }
 0x37c   : > { %v1058_v44 = vpop.xlane.xlu0 %1057 }
 0x37d   : > { %2800 = vrcp.f32 %v1058_v44 }
 0x37e   : > { %v2795_v45 = vpop.eup %2794 }
 0x37f   : > { %v811_v43 = vmul.f32 %v2795_v45, %v3269_v32 }
 0x380   : > { %v1061_v50 = vpop.xlane.xlu1 %1060 }
 0x381   : > { %2802 = vrcp.f32 %v1061_v50  ;;  %v812_v51 = vpack.c.bf16 %v811_v43, %v810_v47 }
 0x382   : > { %v2797_v53 = vpop.eup %2796 }
 0x383   : > { %2575 = vmatmul.mubr.msk.bf16.vlgmr.msra.gmra.mxu1 %vm789_vm4, %v812_v51  ;;  %v931_v57 = vmul.f32 %v2797_v53, %v3274_v37 }
 0x384   : > { %2585 = vmatpush3.bf16.msra.mxu1 %v936_v35  ;;  %v1190_v46 = vpop.xlane.xlu0 %1189  ;;  %2586 = vmatprep.mubr.msk.bf16.mxu1 %vm2940_vm2, %v2939_v25 }
 0x385   : > { %2596 = vmatprep.subr.bf16.mxu1 %v2939_v25  ;;  %2804 = vrcp.f32 %v1190_v46 }
 0x386   : > { %v2799_v56 = vpop.eup %2798 }
 0x387   : > { %v932_v27 = vmul.f32 %v2799_v56, %v3279_v42 }
 0x388   : > { %v1193_v32 = vpop.xlane.xlu1 %1192 }
 0x389   : > { %2806 = vrcp.f32 %v1193_v32  ;;  %v933_v59 = vpack.c.bf16 %v932_v27, %v931_v57 }
 0x38a   : > { %v2801_v49 = vpop.eup %2800 }
 0x38b   : > { %2587 = vmatmul.mubr.msk.bf16.vlgmr.msra.gmra.mxu1 %vm789_vm4, %v933_v59  ;;  %v1064_v1 = vmul.f32 %v2801_v49, %v3284_v48 }
 0x38c   : > { %2597 = vmatpush3.bf16.msra.mxu1 %v1068_v61  ;;  %v1321_v62 = vpop.xlane.xlu0 %1320  ;;  %2598 = vmatprep.mubr.msk.bf16.mxu1 %vm2940_vm2, %v2939_v25 }
 0x38d   : > { %2608 = vmatprep.subr.bf16.mxu1 %v2939_v25  ;;  %2808 = vrcp.f32 %v1321_v62 }
 0x38e   : > { %v2803_v63 = vpop.eup %2802 }
 0x38f   : > { %v1065_v37 = vmul.f32 %v2803_v63, %v3289_v54 }
 0x390   : > { %v1324_v42 = vpop.xlane.xlu1 %1323  ;;  %v1200_v4 = vpop.permute.xlu0 %1199 }
 0x391   : > { %2810 = vrcp.f32 %v1324_v42  ;;  %v1066_v52 = vpack.c.bf16 %v1065_v37, %v1064_v1  ;;  %v2752_v37 = vld [vmem:[%s3069_s23 + $0x8] sm:$0xff]   ;;  %v2753_v42 = vld [vmem:[%s3069_s23] sm:$0xff]  }
 0x392   : > { %v2805_v5 = vpop.eup %2804  ;;  %2662 = vmatprep.subr.bf16.mxu0 %v2752_v37 }
 0x393   : > { %2599 = vmatmul.mubr.msk.bf16.vlgmr.msra.gmra.mxu1 %vm789_vm4, %v1066_v52  ;;  %v1196_v9 = vmul.f32 %v2805_v5, %v3294_v60  ;;  %2663 = vmatpush3.bf16.msra.mxu0 %v2752_v37 }
 0x394   : > { %2609 = vmatpush3.bf16.msra.mxu1 %v1200_v4  ;;  %v1443_v7 = vpop.xlane.xlu1 %1442  ;;  %2610 = vmatprep.mubr.msk.bf16.mxu1 %vm2940_vm2, %v2939_v25 }
 0x395   : > { %2620 = vmatprep.subr.bf16.mxu1 %v2939_v25  ;;  %2664 = vmatprep.subr.bf16.mxu0 %v2753_v42 }
 0x396   : > { %v2807_v8 = vpop.eup %2806 }
 0x397   : > { %v1197_v48 = vmul.f32 %v2807_v8, %v3299_v2  ;;  %2665 = vmatpush3.bf16.msra.mxu0 %v2753_v42 }
 0x398   : > { %v1446_v54 = vpop.xlane.xlu1 %1445 }
 0x399   : > { %v1198_v11 = vpack.c.bf16 %v1197_v48, %v1196_v9  ;;  %2812 = vrcp.f32 %v1446_v54 }
 0x39a   : > { %v2809_v58 = vpop.eup %2808  ;;  %2814 = vrcp.f32 %v1443_v7 }
 0x39b   : > { %2611 = vmatmul.mubr.msk.bf16.vlgmr.msra.gmra.mxu1 %vm789_vm4, %v1198_v11  ;;  %v1327_v14 = vmul.f32 %v2809_v58, %v3303_v55 }
 0x39c   : > { %2621 = vmatpush3.bf16.msra.mxu1 %v3185_v22  ;;  %2622 = vmatprep.mubr.msk.bf16.mxu1 %vm2940_vm2, %v2939_v25 }
 0x39d   : > { %2632 = vmatprep.subr.bf16.mxu1 %v2939_v25 }
 0x39e   : > { %v2811_v13 = vpop.eup %2810 }
 0x39f   : > { %v1328_v60 = vmul.f32 %v2811_v13, %v3308_v12 }
 0x3a0   : > { %v1578_v2 = vpop.xlane.xlu1 %1577 }
 0x3a1   : > { %v1329_v15 = vpack.c.bf16 %v1328_v60, %v1327_v14  ;;  %2816 = vrcp.f32 %v1578_v2 }
 0x3a3   : > { %2623 = vmatmul.mubr.msk.bf16.vlgmr.msra.gmra.mxu1 %vm789_vm4, %v1329_v15 }
 0x3a4   : > { %v1706_v17 = vpop.xlane.xlu1 %1705  ;;  %2634 = vmatprep.mubr.msk.bf16.mxu1 %vm2940_vm2, %v2939_v25 }
 0x3a6   : > { %v2813_v19 = vpop.eup %2812 }
 0x3a7   : > { %v2815_v20 = vpop.eup %2814  ;;  %v1450_v0 = vmul.f32 %v2813_v19, %v3318_v21 }
 0x3a8   : > { %v1709_v22 = vpop.xlane.xlu1 %1708  ;;  %v1449_v18 = vmul.f32 %v2815_v20, %v3313_v16 }
 0x3aa   : > { %v1451_v55 = vpack.c.bf16 %v1450_v0, %v1449_v18 }
 0x3ac   : > { %v1454_v23 = vpop.permute.xlu1 %1453 }
 0x3ad   : > { %2633 = vmatpush3.bf16.msra.mxu1 %v1454_v23 }
 0x3ae   : > { %2644 = vmatprep.subr.bf16.mxu1 %v2939_v25  ;;  %v2817_v21 = vpop.eup %2816 }
 0x3af   : > { %v1582_v30 = vmul.f32 %v2817_v21, %v3322_v3  ;;  %v1784_v21 = vsub.s32 3, %v3098_v10 }
 0x3b0   : > { %2635 = vmatmul.mubr.msk.bf16.vlgmr.msra.gmra.mxu1 %vm789_vm4, %v1451_v55 }
 0x3b1   : > { %2646 = vmatprep.mubr.msk.bf16.mxu1 %vm2940_vm2, %v2939_v25 }
 0x3c1   : > { %v1575_v12 = vpop.xlane.xlu0 %1574 }
 0x3c2   : > { %2818 = vrcp.f32 %v1575_v12 }
 0x3c3   : > { %2820 = vrcp.f32 %v1709_v22 }
 0x3c4   : > { %2822 = vrcp.f32 %v1706_v17 }
 0x3c5   : > { %v1585_v26 = vpop.permute.xlu0 %1584 }
 0x3c6   : > { %2645 = vmatpush3.bf16.msra.mxu1 %v1585_v26 }
 0x3c7   : > { %2656 = vmatprep.subr.bf16.mxu1 %v2939_v25 }
 0x3c9   : > { %v1716_v24 = vpop.permute.xlu0 %1715 }
 0x3cf   : > { %v2819_v16 = vpop.eup %2818 }
 0x3d0   : > { %v1581_v6 = vmul.f32 %v2819_v16, %v3339_v34  ;;  %v2821_v33 = vpop.eup %2820 }
 0x3d1   : > { %v2823_v35 = vpop.eup %2822  ;;  %v1713_v61 = vmul.f32 %v2821_v33, %v3332_v28 }
 0x3d2   : > { %v1583_v31 = vpack.c.bf16 %v1582_v30, %v1581_v6  ;;  %v1712_v36 = vmul.f32 %v2823_v35, %v3326_v29  ;;  %v3426_v6 = vld [vmem:[%s3084_s18] sm:$0xff] }
 0x3d3   : > { %v1785_v30 = vrot.slane %v3426_v6, %v1784_v21 }
 0x3d4   : > { %2647 = vmatmul.mubr.msk.bf16.vlgmr.msra.gmra.mxu1 %vm789_vm4, %v1583_v31  ;;  %v1714_v38 = vpack.c.bf16 %v1713_v61, %v1712_v36  ;;  %v2841_v61 = vld [vmem:[#allocation6] sm:$0xff] }
 0x3d5   : > { %2657 = vmatpush3.bf16.msra.mxu1 %v1716_v24  ;;  %2658 = vmatprep.mubr.msk.bf16.mxu1 %vm2940_vm2, %v2939_v25 }
 0x3dc   : > { %2659 = vmatmul.mubr.msk.bf16.vlgmr.msra.gmra.mxu1 %vm789_vm4, %v1714_v38 }
 0x443   : > { %v850_v34 = vpop.f32.mrf.mxu1 }
 0x444   : > { %857 = vst.msk [vmem:[#allocation2] sm:$0xff] %vm741_vm3, %v850_v34 }
 0x445   : > { %v2576_v3 = vpop.f32.mrf.mxu1 }
 0x447   : > { %v853_v39 = vpop.f32.mrf.mxu1 }
 0x448   : > { %858 = vst.msk [vmem:[#allocation2 + $0x8] sm:$0xff] %vm741_vm3, %v853_v39 }
 0x449   : > { %v2577_v41 = vpop.f32.mrf.mxu1 }
 0x44a   : > { %v2842_v41 = vld [vmem:[#allocation6 + $0x18] sm:$0xff] }
 0x44b   : > { %v975_v40 = vpop.f32.mrf.mxu1 }
 0x44c   : > { %984 = vrot.lane.b32.xlu0 %v975_v40, %s2948_s21 }
 0x44d   : > { %v2588_v25 = vpop.f32.mrf.mxu1 }
 0x44e   : > { %v2843_v25 = vld [vmem:[#allocation6 + $0x8] sm:$0xff] }
 0x44f   : > { %v978_v44 = vpop.f32.mrf.mxu1 }
 0x450   : > { %986 = vrot.lane.b32.xlu0 %v978_v44, %s2948_s21 }
 0x451   : > { %v2589_v29 = vpop.f32.mrf.mxu1 }
 0x453   : > { %v1107_v28 = vpop.f32.mrf.mxu1 }
 0x454   : > { %1116 = vrot.lane.b32.xlu1 %v1107_v28, %s2949_s28 }
 0x455   : > { %v2600_v45 = vpop.f32.mrf.mxu1 }
 0x456   : > { %v2844_v45 = vld [vmem:[#allocation6 + $0x10] sm:$0xff] }
 0x457   : > { %v1110_v47 = vpop.f32.mrf.mxu1 }
 0x458   : > { %1118 = vrot.lane.b32.xlu0 %v1110_v47, %s2949_s28 }
 0x459   : > { %v2601_v43 = vpop.f32.mrf.mxu1 }
 0x45b   : > { %v1239_v50 = vpop.f32.mrf.mxu1 }
 0x45c   : > { %1248 = vrot.lane.b32.xlu1 %v1239_v50, %s2950_s29 }
 0x45d   : > { %v2612_v51 = vpop.f32.mrf.mxu1 }
 0x45f   : > { %v1242_v53 = vpop.f32.mrf.mxu1 }
 0x460   : > { %1250 = vrot.lane.b32.xlu0 %v1242_v53, %s2950_s29 }
 0x461   : > { %v2613_v46 = vpop.f32.mrf.mxu1 }
 0x463   : > { %v1367_v56 = vpop.f32.mrf.mxu1 }
 0x464   : > { %1375 = vst.msk [vmem:[#allocation2 + $0x10] sm:$0xff] %vm741_vm3, %v1367_v56 }
 0x465   : > { %v2624_v57 = vpop.f32.mrf.mxu1 }
 0x467   : > { %v1370_v27 = vpop.f32.mrf.mxu1 }
 0x468   : > { %1376 = vst.msk [vmem:[#allocation2 + $0x18] sm:$0xff] %vm741_vm3, %v1370_v27 }
 0x469   : > { %v2625_v32 = vpop.f32.mrf.mxu1 }
 0x470   : > { %v1493_v59 = vpop.f32.mrf.mxu1 }
 0x471   : > { %1502 = vrot.lane.b32.xlu1 %v1493_v59, %s2948_s21 }
 0x472   : > { %v2636_v49 = vpop.f32.mrf.mxu1 }
 0x474   : > { %v1496_v62 = vpop.f32.mrf.mxu1 }
 0x475   : > { %1504 = vrot.lane.b32.xlu0 %v1496_v62, %s2948_s21 }
 0x476   : > { %v2637_v63 = vpop.f32.mrf.mxu1 }
 0x494   : > { %v1624_v1 = vpop.f32.mrf.mxu1 }
 0x495   : > { %1633 = vrot.lane.b32.xlu1 %v1624_v1, %s2949_s28 }
 0x496   : > { %v2648_v52 = vpop.f32.mrf.mxu1 }
 0x498   : > { %v1627_v4 = vpop.f32.mrf.mxu1 }
 0x499   : > { %1635 = vrot.lane.b32.xlu0 %v1627_v4, %s2949_s28 }
 0x49a   : > { %v2649_v5 = vpop.f32.mrf.mxu1 }
 0x49c   : > { %v1755_v7 = vpop.f32.mrf.mxu1 }
 0x49d   : > { %1764 = vrot.lane.b32.xlu1 %v1755_v7, %s2950_s29 }
 0x49e   : > { %v2660_v8 = vpop.f32.mrf.mxu1 }
 0x4a0   : > { %v1758_v9 = vpop.f32.mrf.mxu1 }
 0x4a1   : > { %1766 = vrot.lane.b32.xlu0 %v1758_v9, %s2950_s29  ;;  %v2754_v9 = vld [vmem:[%s3074_s26 + $0x8] sm:$0xff]  }
 0x4a2   : > { %v2661_v48 = vpop.f32.mrf.mxu1  ;;  %2670 = vmatprep.subr.bf16.mxu1 %v2754_v9 }
 0x4a3   : > { %v2755_v48 = vld [vmem:[%s3074_s26] sm:$0xff]   ;;  %2671 = vmatpush3.bf16.msra.mxu1 %v2754_v9 }
 0x4a4   : > { %2672 = vmatprep.subr.bf16.mxu1 %v2755_v48 }
 0x4a7   : > { %2673 = vmatpush3.bf16.msra.mxu1 %v2755_v48 }
 0x4be   : > { %v985_v54 = vpop.permute.xlu0 %984 }
 0x4bf   : > { %991 = vst.msk [vmem:[#allocation2] sm:$0xff] %vm990_vm5, %v985_v54  ;;  %v2756_v54 = vld [vmem:[%s3079_s30 + $0x18] sm:$0xff]  }
 0x4c0   : > { %2678 = vmatprep.subr.bf16.mxu0 %v2756_v54 }
 0x4c2   : > { %v987_v11 = vpop.permute.xlu0 %986 }
 0x4c3   : > { %992 = vst.msk [vmem:[#allocation2 + $0x8] sm:$0xff] %vm990_vm5, %v987_v11 }
 0x4c6   : > { %v1117_v58 = vpop.permute.xlu1 %1116 }
 0x4c7   : > { %1123 = vst.msk [vmem:[#allocation2] sm:$0xff] %vm1122_vm6, %v1117_v58 }
 0x4ca   : > { %v1119_v13 = vpop.permute.xlu0 %1118 }
 0x4cb   : > { %1124 = vst.msk [vmem:[#allocation2 + $0x8] sm:$0xff] %vm1122_vm6, %v1119_v13 }
 0x4ce   : > { %v1249_v14 = vpop.permute.xlu1 %1248 }
 0x4cf   : > { %1255 = vst.msk [vmem:[#allocation2] sm:$0xff] %vm1254_vm7, %v1249_v14 }
 0x4d2   : > { %v1251_v60 = vpop.permute.xlu0 %1250 }
 0x4d3   : > { %1256 = vst.msk [vmem:[#allocation2 + $0x8] sm:$0xff] %vm1254_vm7, %v1251_v60 }
 0x4d6   : > { %v1772_v2 = vld [vmem:[#allocation2] sm:$0xff] }
 0x4da   : > { %v1773_v15 = vld [vmem:[#allocation2 + $0x8] sm:$0xff] }
 0x4db   : > { %v1776_v17 = vpack.c.bf16 %v1773_v15, %v1772_v2 }
 0x4dd   : > { %2666 = vmatprep.mubr.msk.bf16.mxu0 %vm575_vm1, %v1776_v17 }
 0x4e3   : > { %v1503_v19 = vpop.permute.xlu1 %1502 }
 0x4e4   : > { %1508 = vst.msk [vmem:[#allocation2 + $0x10] sm:$0xff] %vm990_vm5, %v1503_v19 }
 0x4e7   : > { %v1505_v22 = vpop.permute.xlu0 %1504 }
 0x4e8   : > { %1509 = vst.msk [vmem:[#allocation2 + $0x18] sm:$0xff] %vm990_vm5, %v1505_v22 }
 0x507   : > { %v1634_v20 = vpop.permute.xlu1 %1633 }
 0x508   : > { %1639 = vst.msk [vmem:[#allocation2 + $0x10] sm:$0xff] %vm1122_vm6, %v1634_v20 }
 0x50b   : > { %v1636_v0 = vpop.permute.xlu0 %1635 }
 0x50c   : > { %1640 = vst.msk [vmem:[#allocation2 + $0x18] sm:$0xff] %vm1122_vm6, %v1636_v0 }
 0x50f   : > { %v1765_v23 = vpop.permute.xlu1 %1764 }
 0x510   : > { %1770 = vst.msk [vmem:[#allocation2 + $0x10] sm:$0xff] %vm1254_vm7, %v1765_v23  ;;  %v1912_v23 = vsub.s32 4, %v3098_v10 }
 0x513   : > { %v1767_v18 = vpop.permute.xlu0 %1766 }
 0x514   : > { %1771 = vst.msk [vmem:[#allocation2 + $0x18] sm:$0xff] %vm1254_vm7, %v1767_v18 }
 0x517   : > { %v1774_v55 = vld [vmem:[#allocation2 + $0x10] sm:$0xff] }
 0x51b   : > { %v1775_v12 = vld [vmem:[#allocation2 + $0x18] sm:$0xff] }
 0x51c   : > { %v1777_v26 = vpack.c.bf16 %v1775_v12, %v1774_v55  ;;  %v1913_v12 = vrot.slane %v3426_v6, %v1912_v23 }
 0x51e   : > { %2667 = vmatmul.mubr.msk.bf16.vlgmr.msra.gmra.mxu0 %vm575_vm1, %v1777_v26  ;;  %v1920_v26 = vsub.s32 5, %v3098_v10 }
 0x51f   : > { %2679 = vmatpush3.bf16.msra.mxu0 %v2756_v54 }
 0x5de   : > { %v2668_v16 = vpop.f32.mrf.mxu0 }
 0x5df   : > { %v1847_v34 = vadd.f32 %v2668_v16, %v1785_v30 }
 0x5e0   : > { %v1838_v31 = vpop.f32.mrf.mxu0 }
 0x5e1   : > { %v1839_v33 = vadd.f32 %v1838_v31, %v1785_v30  ;;  %v1855_v47 = vadd.f32 %v2844_v45, %v1847_v34  ;;  %v1921_v31 = vrot.slane %v3426_v6, %v1920_v26  ;;  %v2759_v45 = vld [vmem:[%s3079_s30] sm:$0xff]  }
 0x5e2   : > { %v2669_v24 = vpop.f32.mrf.mxu0 }
 0x5e3   : > { %v1850_v35 = vadd.f32 %v2669_v24, %v1785_v30  ;;  %v1853_v36 = vadd.f32 %v2841_v61, %v1839_v33  ;;  %v1863_v43 = vsel %vm575_vm1, %v1855_v47, 0.0 }
 0x5e4   : > { %v1841_v38 = vpop.f32.mrf.mxu0 }
 0x5e5   : > { %v1842_v3 = vadd.f32 %v1841_v38, %v1785_v30  ;;  %v1857_v39 = vsel %vm575_vm1, %v1853_v36, 0.0  ;;  %v1856_v40 = vadd.f32 %v2842_v41, %v1850_v35 }
 0x5e6   : > { %1858 = vadd.xlane.f32.xlu1 %v1857_v39 }
 0x5e7   : > { %v1854_v44 = vadd.f32 %v2843_v25, %v1842_v3  ;;  %v1866_v28 = vsel %vm575_vm1, %v1856_v40, 0.0 }
 0x5e9   : > { %v1860_v29 = vsel %vm575_vm1, %v1854_v44, 0.0 }
 0x5ea   : > { %1861 = vadd.xlane.f32.xlu0 %v1860_v29  ;;  %1867 = vadd.xlane.f32.xlu1 %v1866_v28  ;;  %v2757_v29 = vld [vmem:[%s3079_s30 + $0x10] sm:$0xff]   ;;  %v2758_v28 = vld [vmem:[%s3079_s30 + $0x8] sm:$0xff]  }
 0x5eb   : > { %2680 = vmatprep.subr.bf16.mxu0 %v2757_v29 }
 0x5ec   : > { %2681 = vmatpush3.bf16.msra.mxu0 %v2757_v29 }
 0x5ed   : > { %2682 = vmatprep.subr.bf16.mxu0 %v2758_v28 }
 0x5ee   : > { %1864 = vadd.xlane.f32.xlu0 %v1863_v43 }
 0x5f0   : > { %2683 = vmatpush3.bf16.msra.mxu0 %v2758_v28 }
 0x5f1   : > { %2684 = vmatprep.subr.bf16.mxu0 %v2759_v45 }
 0x5f4   : > { %2685 = vmatpush3.bf16.msra.mxu0 %v2759_v45 }
 0x66f   : > { %v1859_v50 = vpop.xlane.xlu1 %1858 }
 0x670   : > { %v1870_v51 = vmul.f32 0.03125, %v1859_v50  ;;  %v2470_v50 = vld [vmem:[%s526_s19] ss:$0 sm:$0xff] }
 0x672   : > { %v1874_v53 = vsub.f32 %v1853_v36, %v1870_v51 }
 0x673   : > { %v1862_v46 = vpop.xlane.xlu0 %1861  ;;  %v1868_v56 = vpop.xlane.xlu1 %1867 }
 0x674   : > { %v1871_v57 = vmul.f32 0.03125, %v1862_v46  ;;  %v1873_v27 = vmul.f32 0.03125, %v1868_v56  ;;  %v1878_v32 = vmul.f32 %v1874_v53, %v1874_v53 }
 0x676   : > { %v1875_v59 = vsub.f32 %v1854_v44, %v1871_v57  ;;  %v1877_v49 = vsub.f32 %v1856_v40, %v1873_v27  ;;  %v1882_v62 = vsel %vm575_vm1, %v1878_v32, 0.0 }
 0x677   : > { %v1865_v63 = vpop.xlane.xlu0 %1864  ;;  %1883 = vadd.xlane.f32.xlu0 %v1882_v62 }
 0x678   : > { %v1872_v1 = vmul.f32 0.03125, %v1865_v63  ;;  %v1879_v37 = vmul.f32 %v1875_v59, %v1875_v59  ;;  %v1881_v4 = vmul.f32 %v1877_v49, %v1877_v49 }
 0x67a   : > { %v1876_v42 = vsub.f32 %v1855_v47, %v1872_v1  ;;  %v1885_v52 = vsel %vm575_vm1, %v1879_v37, 0.0  ;;  %v1891_v8 = vsel %vm575_vm1, %v1881_v4, 0.0  ;;  %v2021_v37 = vsub.s32 6, %v3098_v10 }
 0x67b   : > { %1886 = vadd.xlane.f32.xlu1 %v1885_v52 }
 0x67c   : > { %v1880_v5 = vmul.f32 %v1876_v42, %v1876_v42 }
 0x67e   : > { %v1888_v7 = vsel %vm575_vm1, %v1880_v5, 0.0 }
 0x67f   : > { %1889 = vadd.xlane.f32.xlu0 %v1888_v7  ;;  %1892 = vadd.xlane.f32.xlu1 %v1891_v8 }
 0x700   : > { %v1884_v11 = vpop.xlane.xlu0 %1883 }
 0x701   : > { %v1894_v58 = vmul.f32 0.03125, %v1884_v11 }
 0x703   : > { %v1898_v13 = vadd.f32 1e-05, %v1894_v58 }
 0x704   : > { %v1887_v14 = vpop.xlane.xlu1 %1886 }
 0x705   : > { %2824 = vrsqrt.f32 %v1898_v13  ;;  %v1895_v60 = vmul.f32 0.03125, %v1887_v14 }
 0x707   : > { %v1899_v2 = vadd.f32 1e-05, %v1895_v60 }
 0x708   : > { %v1890_v15 = vpop.xlane.xlu0 %1889  ;;  %v1893_v17 = vpop.xlane.xlu1 %1892 }
 0x709   : > { %2826 = vrsqrt.f32 %v1899_v2  ;;  %v1896_v19 = vmul.f32 0.03125, %v1890_v15  ;;  %v1897_v22 = vmul.f32 0.03125, %v1893_v17 }
 0x70b   : > { %v1900_v20 = vadd.f32 1e-05, %v1896_v19  ;;  %v1901_v0 = vadd.f32 1e-05, %v1897_v22 }
 0x70d   : > { %2828 = vrsqrt.f32 %v1900_v20 }
 0x70e   : > { %2830 = vrsqrt.f32 %v1901_v0 }
 0x712   : > { %v2825_v18 = vpop.eup %2824 }
 0x713   : > { %v1906_v55 = vmul.f32 %v2825_v18, %v1874_v53 }
 0x715   : > { %v1914_v30 = vmul.f32 %v1913_v12, %v1906_v55 }
 0x716   : > { %v2827_v21 = vpop.eup %2826 }
 0x717   : > { %v1907_v16 = vmul.f32 %v2827_v21, %v1875_v59  ;;  %v1922_v36 = vadd.f32 %v1921_v31, %v1914_v30 }
 0x719   : > { %v1915_v33 = vmul.f32 %v1913_v12, %v1907_v16 }
 0x71a   : > { %v2829_v24 = vpop.eup %2828 }
 0x71b   : > { %v2831_v35 = vpop.eup %2830  ;;  %v1908_v61 = vmul.f32 %v2829_v24, %v1876_v42  ;;  %v1923_v38 = vadd.f32 %v1921_v31, %v1915_v33  ;;  %v2022_v42 = vrot.slane %v3426_v6, %v2021_v37 }
 0x71c   : > { %v1909_v34 = vmul.f32 %v2831_v35, %v1877_v49 }
 0x71d   : > { %v1926_v3 = vpack.c.bf16 %v1923_v38, %v1922_v36  ;;  %v1916_v39 = vmul.f32 %v1913_v12, %v1908_v61 }
 0x71e   : > { %v1917_v41 = vmul.f32 %v1913_v12, %v1909_v34 }
 0x71f   : > { %2674 = vmatprep.mubr.msk.bf16.mxu1 %vm575_vm1, %v1926_v3  ;;  %v1924_v40 = vadd.f32 %v1921_v31, %v1916_v39 }
 0x720   : > { %v1925_v25 = vadd.f32 %v1921_v31, %v1917_v41 }
 0x722   : > { %v1927_v44 = vpack.c.bf16 %v1925_v25, %v1924_v40 }
 0x724   : > { %2675 = vmatmul.mubr.msk.bf16.vlgmr.msra.gmra.mxu1 %vm575_vm1, %v1927_v44 }
 0x7e4   : > { %v2676_v47 = vpop.f32.mrf.mxu1 }
 0x7e5   : > { %v1999_v56 = vadd.f32 %v2676_v47, %v2470_v50 }
 0x7e6   : > { %v1990_v43 = vpop.f32.mrf.mxu1 }
 0x7e7   : > { %v1991_v53 = vadd.f32 %v2470_v50, %v1990_v43  ;;  %v2007_v62 = vmax.f32 %v1999_v56, 0.0 }
 0x7e8   : > { %v2677_v51 = vpop.f32.mrf.mxu1 }
 0x7e9   : > { %v2002_v46 = vadd.f32 %v2677_v51, %v2470_v50  ;;  %v2005_v59 = vmax.f32 %v1991_v53, 0.0  ;;  %v2161_v51 = vsub.s32 7, %v3098_v10 }
 0x7ea   : > { %v1993_v57 = vpop.f32.mrf.mxu1 }
 0x7eb   : > { %v1994_v27 = vadd.f32 %v2470_v50, %v1993_v57  ;;  %v2008_v32 = vmax.f32 %v2002_v46, 0.0  ;;  %v2162_v53 = vrot.slane %v3426_v6, %v2161_v51  ;;  %v2481_v57 = vld [vmem:[%s3084_s18 + $0x8] ss:$0 sm:$0xff] }
 0x7ed   : > { %v2006_v49 = vmax.f32 %v1994_v27, 0.0  ;;  %v2010_v1 = vpack.c.bf16 %v2008_v32, %v2007_v62 }
 0x7ef   : > { %v2009_v63 = vpack.c.bf16 %v2006_v49, %v2005_v59 }
 0x7f1   : > { %2686 = vmatprep.mubr.msk.bf16.mxu0 %vm2047_vm8, %v2009_v63 }
 0x7f2   : > { %2687 = vmatmul.mubr.msk.bf16.vlgmr.msra.gmra.mxu0 %vm2047_vm8, %v2010_v1 }
 0x8b2   : > { %v2688_v52 = vpop.f32.mrf.mxu0 }
 0x8b3   : > { %v2097_v5 = vadd.f32 %v2688_v52, %v2022_v42 }
 0x8b4   : > { %v2088_v4 = vpop.f32.mrf.mxu0 }
 0x8b5   : > { %v2089_v7 = vadd.f32 %v2088_v4, %v2022_v42  ;;  %v2105_v13 = vadd.f32 %v2097_v5, %v1924_v40 }
 0x8b6   : > { %v2689_v8 = vpop.f32.mrf.mxu0 }
 0x8b7   : > { %v2103_v9 = vadd.f32 %v2089_v7, %v1922_v36  ;;  %v2100_v54 = vadd.f32 %v2689_v8, %v2022_v42  ;;  %v2113_v2 = vsel %vm575_vm1, %v2105_v13, 0.0 }
 0x8b8   : > { %v2091_v48 = vpop.f32.mrf.mxu0 }
 0x8b9   : > { %v2092_v11 = vadd.f32 %v2091_v48, %v2022_v42  ;;  %v2107_v58 = vsel %vm575_vm1, %v2103_v9, 0.0  ;;  %v2106_v15 = vadd.f32 %v2100_v54, %v1925_v25 }
 0x8ba   : > { %2108 = vadd.xlane.f32.xlu0 %v2107_v58 }
 0x8bb   : > { %v2104_v14 = vadd.f32 %v2092_v11, %v1923_v38  ;;  %v2116_v17 = vsel %vm575_vm1, %v2106_v15, 0.0 }
 0x8bd   : > { %v2110_v60 = vsel %vm575_vm1, %v2104_v14, 0.0 }
 0x8be   : > { %2111 = vadd.xlane.f32.xlu1 %v2110_v60  ;;  %2114 = vadd.xlane.f32.xlu0 %v2113_v2 }
 0x8c2   : > { %2117 = vadd.xlane.f32.xlu1 %v2116_v17 }
 0x943   : > { %v2109_v19 = vpop.xlane.xlu0 %2108 }
 0x944   : > { %v2119_v22 = vmul.f32 0.03125, %v2109_v19 }
 0x946   : > { %v2123_v20 = vsub.f32 %v2103_v9, %v2119_v22 }
 0x947   : > { %v2112_v0 = vpop.xlane.xlu1 %2111  ;;  %v2115_v23 = vpop.xlane.xlu0 %2114 }
 0x948   : > { %v2120_v18 = vmul.f32 0.03125, %v2112_v0  ;;  %v2121_v55 = vmul.f32 0.03125, %v2115_v23  ;;  %v2127_v12 = vmul.f32 %v2123_v20, %v2123_v20 }
 0x94a   : > { %v2124_v26 = vsub.f32 %v2104_v14, %v2120_v18  ;;  %v2125_v21 = vsub.f32 %v2105_v13, %v2121_v55  ;;  %v2131_v16 = vsel %vm575_vm1, %v2127_v12, 0.0 }
 0x94b   : > { %v2118_v30 = vpop.xlane.xlu1 %2117  ;;  %2132 = vadd.xlane.f32.xlu0 %v2131_v16 }
 0x94c   : > { %v2122_v31 = vmul.f32 0.03125, %v2118_v30  ;;  %v2128_v33 = vmul.f32 %v2124_v26, %v2124_v26  ;;  %v2129_v24 = vmul.f32 %v2125_v21, %v2125_v21 }
 0x94e   : > { %v2126_v35 = vsub.f32 %v2106_v15, %v2122_v31  ;;  %v2134_v61 = vsel %vm575_vm1, %v2128_v33, 0.0  ;;  %v2137_v36 = vsel %vm575_vm1, %v2129_v24, 0.0 }
 0x94f   : > { %2135 = vadd.xlane.f32.xlu1 %v2134_v61  ;;  %2138 = vadd.xlane.f32.xlu0 %v2137_v36 }
 0x950   : > { %v2130_v38 = vmul.f32 %v2126_v35, %v2126_v35 }
 0x952   : > { %v2140_v34 = vsel %vm575_vm1, %v2130_v38, 0.0 }
 0x953   : > { %2141 = vadd.xlane.f32.xlu1 %v2140_v34 }
 0x9d4   : > { %v2133_v3 = vpop.xlane.xlu0 %2132 }
 0x9d5   : > { %v2143_v39 = vmul.f32 0.03125, %v2133_v3 }
 0x9d7   : > { %v2147_v41 = vadd.f32 1e-05, %v2143_v39 }
 0x9d8   : > { %v2136_v40 = vpop.xlane.xlu1 %2135  ;;  %v2139_v25 = vpop.xlane.xlu0 %2138 }
 0x9d9   : > { %2832 = vrsqrt.f32 %v2147_v41  ;;  %v2144_v44 = vmul.f32 0.03125, %v2136_v40  ;;  %v2145_v29 = vmul.f32 0.03125, %v2139_v25 }
 0x9db   : > { %v2148_v28 = vadd.f32 1e-05, %v2144_v44  ;;  %v2149_v45 = vadd.f32 1e-05, %v2145_v29 }
 0x9dc   : > { %v2142_v47 = vpop.xlane.xlu1 %2141 }
 0x9dd   : > { %2834 = vrsqrt.f32 %v2148_v28  ;;  %v2146_v43 = vmul.f32 0.03125, %v2142_v47 }
 0x9de   : > { %2836 = vrsqrt.f32 %v2149_v45 }
 0x9df   : > { %v2150_v50 = vadd.f32 1e-05, %v2146_v43 }
 0x9e1   : > { %2838 = vrsqrt.f32 %v2150_v50 }
 0x9e6   : > { %v2833_v46 = vpop.eup %2832 }
 0x9e7   : > { %v2155_v56 = vmul.f32 %v2833_v46, %v2123_v20 }
 0x9e9   : > { %v2163_v27 = vmul.f32 %v2162_v53, %v2155_v56 }
 0x9ea   : > { %v2835_v32 = vpop.eup %2834 }
 0x9eb   : > { %v2837_v59 = vpop.eup %2836  ;;  %v2171_v49 = vadd.f32 %v2481_v57, %v2163_v27  ;;  %v2156_v62 = vmul.f32 %v2835_v32, %v2124_v26 }
 0x9ec   : > { %v2157_v63 = vmul.f32 %v2837_v59, %v2125_v21 }
 0x9ed   : > { %v2164_v1 = vmul.f32 %v2162_v53, %v2156_v62 }
 0x9ee   : > { %v2839_v37 = vpop.eup %2838  ;;  %v2165_v42 = vmul.f32 %v2162_v53, %v2157_v63 }
 0x9ef   : > { %v2172_v52 = vadd.f32 %v2481_v57, %v2164_v1  ;;  %v2158_v4 = vmul.f32 %v2839_v37, %v2126_v35  ;;  %2178 = sbr.rel (%p2482_p3) target bundleno = 2550 (0x9f6), region = 72 }
 0x9f0   : > { %v2173_v5 = vadd.f32 %v2481_v57, %v2165_v42 }
 0x9f1   : > { %v2166_v7 = vmul.f32 %v2162_v53, %v2158_v4 }
 0x9f3   : > { %v2174_v10 = vadd.f32 %v2481_v57, %v2166_v7 }
 0x9f4   : > { %2179 = vst.msk [vmem:[#allocation6] sm:$0xff] %vm575_vm1, %v2171_v49  ;;  %2180 = vst.msk [vmem:[#allocation6 + $0x8] sm:$0xff] %vm575_vm1, %v2172_v52 }
 0x9f5   : > { %2181 = vst.msk [vmem:[#allocation6 + $0x10] sm:$0xff] %vm575_vm1, %v2173_v5  ;;  %2182 = vst.msk [vmem:[#allocation6 + $0x18] sm:$0xff] %vm575_vm1, %v2174_v10 }
 0x9f6 PF: > { %p2483_p4 = scmp.ne.s32.totalorder %s2925_s13, 1 }
 0x9f8   : > { %2186 = sbr.rel (%p2483_p4) target bundleno = 2874 (0xb3a), region = 76 }
 0x9fd   : > { %v2189_v6 = vsel %vm575_vm1, %v2171_v49, 0.0  ;;  %v2195_v8 = vsel %vm575_vm1, %v2173_v5, 0.0  ;;  %v2192_v9 = vsel %vm575_vm1, %v2172_v52, 0.0  ;;  %v2198_v48 = vsel %vm575_vm1, %v2174_v10, 0.0  ;;  %v2484_v25 = vld [vmem:[%s3527_s9] ss:$0 sm:$0xff] }
 0x9fe   : > { %2190 = vadd.xlane.f32.xlu0 %v2189_v6  ;;  %2196 = vadd.xlane.f32.xlu1 %v2195_v8  ;;  %v2485_v29 = vld [vmem:[%s3527_s9 + $0x1] ss:$0 sm:$0xff] }
 0xa02   : > { %2193 = vadd.xlane.f32.xlu0 %v2192_v9  ;;  %2199 = vadd.xlane.f32.xlu1 %v2198_v48 }
 0xa87   : > { %v2191_v54 = vpop.xlane.xlu0 %2190  ;;  %v2197_v11 = vpop.xlane.xlu1 %2196 }
 0xa88   : > { %v2201_v58 = vmul.f32 0.03125, %v2191_v54  ;;  %v2203_v13 = vmul.f32 0.03125, %v2197_v11 }
 0xa8a   : > { %v2205_v14 = vsub.f32 %v2171_v49, %v2201_v58  ;;  %v2207_v60 = vsub.f32 %v2173_v5, %v2203_v13 }
 0xa8b   : > { %v2194_v2 = vpop.xlane.xlu0 %2193  ;;  %v2200_v15 = vpop.xlane.xlu1 %2199 }
 0xa8c   : > { %v2202_v17 = vmul.f32 0.03125, %v2194_v2  ;;  %v2204_v19 = vmul.f32 0.03125, %v2200_v15  ;;  %v2209_v22 = vmul.f32 %v2205_v14, %v2205_v14  ;;  %v2211_v20 = vmul.f32 %v2207_v60, %v2207_v60 }
 0xa8e   : > { %v2206_v0 = vsub.f32 %v2172_v52, %v2202_v17  ;;  %v2208_v23 = vsub.f32 %v2174_v10, %v2204_v19  ;;  %v2213_v18 = vsel %vm575_vm1, %v2209_v22, 0.0  ;;  %v2219_v55 = vsel %vm575_vm1, %v2211_v20, 0.0 }
 0xa8f   : > { %2214 = vadd.xlane.f32.xlu0 %v2213_v18 }
 0xa90   : > { %v2210_v12 = vmul.f32 %v2206_v0, %v2206_v0  ;;  %v2212_v26 = vmul.f32 %v2208_v23, %v2208_v23 }
 0xa92   : > { %v2216_v21 = vsel %vm575_vm1, %v2210_v12, 0.0  ;;  %v2222_v16 = vsel %vm575_vm1, %v2212_v26, 0.0 }
 0xa93   : > { %2220 = vadd.xlane.f32.xlu0 %v2219_v55  ;;  %2217 = vadd.xlane.f32.xlu1 %v2216_v21 }
 0xa97   : > { %2223 = vadd.xlane.f32.xlu1 %v2222_v16 }
 0xb18   : > { %v2215_v30 = vpop.xlane.xlu0 %2214 }
 0xb19   : > { %v2225_v31 = vmul.f32 0.03125, %v2215_v30 }
 0xb1b   : > { %v2229_v33 = vadd.f32 1e-05, %v2225_v31 }
 0xb1c   : > { %v2218_v24 = vpop.xlane.xlu1 %2217  ;;  %v2221_v35 = vpop.xlane.xlu0 %2220 }
 0xb1d   : > { %2845 = vrsqrt.f32 %v2229_v33  ;;  %v2226_v61 = vmul.f32 0.03125, %v2218_v24  ;;  %v2227_v36 = vmul.f32 0.03125, %v2221_v35 }
 0xb1f   : > { %v2230_v38 = vadd.f32 1e-05, %v2226_v61  ;;  %v2231_v34 = vadd.f32 1e-05, %v2227_v36 }
 0xb20   : > { %v2224_v3 = vpop.xlane.xlu1 %2223 }
 0xb21   : > { %2847 = vrsqrt.f32 %v2230_v38  ;;  %v2228_v39 = vmul.f32 0.03125, %v2224_v3 }
 0xb22   : > { %2849 = vrsqrt.f32 %v2231_v34 }
 0xb23   : > { %v2232_v41 = vadd.f32 1e-05, %v2228_v39 }
 0xb25   : > { %2851 = vrsqrt.f32 %v2232_v41 }
 0xb2a   : > { %v2846_v40 = vpop.eup %2845 }
 0xb2b   : > { %v2237_v44 = vmul.f32 %v2846_v40, %v2205_v14 }
 0xb2d   : > { %v2245_v28 = vmul.f32 %v2484_v25, %v2237_v44 }
 0xb2e   : > { %v2848_v45 = vpop.eup %2847 }
 0xb2f   : > { %v2850_v47 = vpop.eup %2849  ;;  %v2253_v43 = vadd.f32 %v2485_v29, %v2245_v28  ;;  %v2238_v50 = vmul.f32 %v2848_v45, %v2206_v0 }
 0xb30   : > { %v2239_v51 = vmul.f32 %v2850_v47, %v2207_v60 }
 0xb31   : > { %2257 = vst.msk [vmem:[#allocation6] sm:$0xff] %vm575_vm1, %v2253_v43  ;;  %v2246_v53 = vmul.f32 %v2484_v25, %v2238_v50 }
 0xb32   : > { %v2852_v46 = vpop.eup %2851  ;;  %v2247_v56 = vmul.f32 %v2484_v25, %v2239_v51 }
 0xb33   : > { %v2254_v57 = vadd.f32 %v2485_v29, %v2246_v53  ;;  %v2240_v27 = vmul.f32 %v2852_v46, %v2208_v23 }
 0xb34   : > { %v2255_v32 = vadd.f32 %v2485_v29, %v2247_v56 }
 0xb35   : > { %2258 = vst.msk [vmem:[#allocation6 + $0x8] sm:$0xff] %vm575_vm1, %v2254_v57  ;;  %v2248_v59 = vmul.f32 %v2484_v25, %v2240_v27 }
 0xb36   : > { %2259 = vst.msk [vmem:[#allocation6 + $0x10] sm:$0xff] %vm575_vm1, %v2255_v32 }
 0xb37   : > { %v2256_v49 = vadd.f32 %v2485_v29, %v2248_v59 }
 0xb39   : > { %2260 = vst.msk [vmem:[#allocation6 + $0x18] sm:$0xff] %vm575_vm1, %v2256_v49 }
 0xb3a PF: > { %s3538_s19 = sadd.s32 4294967295, %s2933_s15   ;;  %s2951_s22 = smov [#allocation6]  }
 0xb3b   : > { %p3493_p5 = scmp.eq.s32.totalorder %s3538_s19, 1  ;;  %s2271_s24 = sshll.u32 %s2951_s22, 4  ;;  %s2272_s24 = int_to_ptr.vmem [resolvable:$true] %s2271_s24 }
 0xb3c   : > { %s2879_s25 = scalar_lea.vmem %s2272_s24, 512  ;;  %p2886_p9 = scmp.lt.s32.totalorder %s2272_s24, %s2272_s24 }
 0xb3d   : > { %p2880_p6 = scmp.ne.s32.totalorder %s2272_s24, %s2879_s25  ;;  %p2887_p10 = scmp.lt.s32.totalorder %s2879_s25, %s2879_s25 }
 0xb3f   : > { %p2881_p7 = pnand %p2880_p6, %p3493_p5  ;;  %p2888_p11 = por %p2887_p10, %p2886_p9 }
 0xb41   : > { %p2882_p8 = pneg %p2881_p7 }
 0xb43   : > { %p2889_p12 = pnand %p2888_p11, %p2882_p8 }
 0xb45   : > { %2892 = shalt.err (!%p2889_p12)
}
 0xb46   : > { %s2952_s11 = smov 128  }
 0xb47   : > { %2695 = dma.vmem_to_hbm [thread:$0]  (%p3493_p5), %s2272_s24, 512, %s3528_s10, [#allocation5], %s2952_s11, %s2952_s11, %s2948_s21  }
 0xb48   : > { %2920 = dma.done.wait (%p3493_p5), [#allocation5], 512  }
 0xb49   : > { %2922 = vsyncadd (%p3493_p5), [#allocation5], 4294966784 }
 0xb4a PF: > { %s22_s15 = sadd.s32 1, %s2933_s15   ;;  %s3540_s13 = smov %s2929_s14 }
 0xb4b   : > { %p19_p13 = scmp.ge.s32.totalorder %s22_s15, 4   ;;  %s3541_s14 = smov %s3543_s17 }
 0xb4d   :  { %21 = sbr.rel (!%p19_p13) target bundleno = 7 (0x7), region = 128 }
 0xb52   :  { %2287 = vsyncpa [#allocation4], 1 }
 0xb53   :  { %2289 = vsyncpa [#allocation4 + $0x1], 1 }
 0xb54   :  { %2290 = vsyncpa [#allocation5], 1 }
 0xb55   :  { %2292 = vsyncpa [#allocation5 + $0x1], 1 }

</bundles_post_ra>
